<compile_context>
chip_gen: v6e
topology: v6e:2x2x1
jax: 0.10.0
libtpu: 0.0.40
codegen_flags: <defaults>
</compile_context>

<pallas_src>
import functools

import jax
import jax.numpy as jnp
from jax.experimental import pallas as pl
from jax.experimental.pallas import tpu as pltpu

_LANE = 128
_SUBLANE = 8


def _round_up(x, m):
    return ((x + m - 1) // m) * m


def _accumulate_step(adj, rhs, b_ref, out_ref, denom_ref, *, fast):
    """Shared k-step body: denom row-sum + adj@rhs accumulation + finalize."""
    k = pl.program_id(2)

    @pl.when(k == 0)
    def _init():
        out_ref[...] = jnp.zeros_like(out_ref)
        denom_ref[...] = jnp.zeros_like(denom_ref)

    # Exact f32 accumulation of adjacency row sums (denominator), even when
    # adj is stored bf16 at rest. The small VPU cast hides under the adj DMA.
    denom_ref[...] += jnp.sum(adj.astype(jnp.float32), axis=1, keepdims=True)

    # Dominant matmul: bf16 operands (fast path) with f32 accumulation
    # directly into the resident f32 output block.
    out_ref[...] += jnp.dot(adj, rhs, preferred_element_type=jnp.float32)

    @pl.when(k == pl.num_programs(2) - 1)
    def _finalize():
        inv = pl.reciprocal(denom_ref[...] + 1.0, approx=fast)   # EUP slot
        out_ref[...] = out_ref[...] * inv + b_ref[...]


def _gcn_kernel_recompute(text_ref, adj_ref, w_ref, b_ref, out_ref, denom_ref,
                          *, fast):
    # text_ref : (tk, IN)    rows of `text` for contraction block k (mm dtype)
    # adj_ref  : (tm, tk)    adjacency tile (row block i, col block k)
    # w_ref    : (IN, OUTp)  weight, VMEM-resident (constant index_map)
    # b_ref    : (1, OUTp)   bias (f32)
    # out_ref  : (tm, OUTp)  f32 output block (lane-dense), used as accumulator
    # denom_ref: (tm, 1)     f32 row-sum scratch
    hidden = jnp.dot(text_ref[...], w_ref[...],
                     preferred_element_type=jnp.float32)          # (tk, OUTp)
    if fast:
        hidden = hidden.astype(jnp.bfloat16)
    _accumulate_step(adj_ref[...], hidden, b_ref, out_ref, denom_ref, fast=fast)


def _gcn_kernel_hoisted(hidden_ref, adj_ref, b_ref, out_ref, denom_ref, *, fast):
    # hidden_ref: (tk, OUTp) precomputed hidden rows for contraction block k
    _accumulate_step(adj_ref[...], hidden_ref[...], b_ref, out_ref, denom_ref,
                     fast=fast)


def graph_convolution(text, adj, weight, bias=None, *, use_bf16_matmul=True):
    """GCN forward: text [B,N,IN], adj [B,N,N], weight [IN,OUT], bias [OUT].

    use_bf16_matmul=True stores adj/text/weight bf16 in HBM and feeds the MXU
    bf16 operands (exact for 0/1 adjacency); set False for normalized /
    non-binary adjacencies that need full f32 precision.
    """
    B, N, IN = text.shape
    IN_w, OUT = weight.shape
    assert IN_w == IN

    f32 = jnp.float32
    mm_dtype = jnp.bfloat16 if use_bf16_matmul else f32
    itm = jnp.dtype(mm_dtype).itemsize
    OUTp = _round_up(OUT, _LANE)           # lane-dense output last dim

    # ---- tile selection ---------------------------------------------------
    if N > _LANE:
        N_pad = _round_up(N, _LANE)
        tile = _LANE
        for cand in (512, 256):            # biggest tile that divides padded N
            if N_pad % cand == 0:
                tile = cand
                break
    else:
        N_pad = _round_up(N, _SUBLANE)
        tile = N_pad                       # tiny graph: one sublane-aligned tile
    tm = tk = tile

    # v7x has 2 TensorCores sharing the parallel grid axes: keep B*n_i >= 2.
    if B * (N_pad // tm) < 2 and tm >= 2 * _LANE:
        tm //= 2

    hoist_hidden = (IN >= OUTp) or (IN >= tm)
    stream_cols = OUTp if hoist_hidden else IN

    def _vmem_est(tm_, tk_):
        return (2 * tm_ * tk_ * itm                     # adj tiles (2 buffers)
                + 2 * tk_ * stream_cols * itm           # text / hidden tiles
                + 2 * tm_ * OUTp * 4                    # resident f32 out block
                + (0 if hoist_hidden else 2 * IN * OUTp * itm)   # weight
                + 2 * OUTp * 4                          # bias
                + tm_ * 4)                              # denom scratch

    # Keep the pipeline comfortably inside v7x's 64 MiB (32 MiB scoped) VMEM.
    while _vmem_est(tm, tk) > (24 << 20) and tm > _LANE:
        tm //= 2
    vmem_limit = int(min(max(2 * _vmem_est(tm, tk), 32 << 20), 48 << 20))

    n_i = N_pad // tm
    n_k = N_pad // tk
    grid = (B, n_i, n_k)

    # ---- prepare operands (cast at rest; fuse any pad with the cast) -------
    adj_mm = adj.astype(mm_dtype)
    if N_pad != N:
        adj_mm = jnp.pad(adj_mm, ((0, 0), (0, N_pad - N), (0, N_pad - N)))

    if bias is None:
        bias2d = jnp.zeros((1, OUTp), dtype=f32)
    else:
        bias2d = bias.astype(f32).reshape(1, OUT)
        if OUTp != OUT:
            bias2d = jnp.pad(bias2d, ((0, 0), (0, OUTp - OUT)))

    weight_mm = weight.astype(mm_dtype)
    if OUTp != OUT:
        weight_mm = jnp.pad(weight_mm, ((0, 0), (0, OUTp - OUT)))

    if hoist_hidden:
        # text @ W once in XLA (MXU-sized K), streamed as hidden tiles.
        hidden = jnp.matmul(text.astype(mm_dtype), weight_mm)
        if N_pad != N:
            hidden = jnp.pad(hidden, ((0, 0), (0, N_pad - N), (0, 0)))
        kernel = functools.partial(_gcn_kernel_hoisted, fast=use_bf16_matmul)
        in_specs = [
            pl.BlockSpec((pl.Squeezed(), tk, OUTp), lambda b, i, k: (b, k, 0)),
            pl.BlockSpec((pl.Squeezed(), tm, tk), lambda b, i, k: (b, i, k)),
            pl.BlockSpec((1, OUTp), lambda b, i, k: (0, 0)),
        ]
        operands = (hidden, adj_mm, bias2d)
        kernel_flops = 2 * B * N_pad * N_pad * OUTp
        kernel_bytes = (B * N_pad * N_pad * itm            # adj
                        + B * n_i * N_pad * OUTp * itm     # hidden tiles
                        + OUTp * 4                         # bias
                        + B * N_pad * OUTp * 4)            # output
    else:
        text_mm = text.astype(mm_dtype)
        if N_pad != N:
            text_mm = jnp.pad(text_mm, ((0, 0), (0, N_pad - N), (0, 0)))
        kernel = functools.partial(_gcn_kernel_recompute, fast=use_bf16_matmul)
        in_specs = [
            pl.BlockSpec((pl.Squeezed(), tk, IN), lambda b, i, k: (b, k, 0)),
            pl.BlockSpec((pl.Squeezed(), tm, tk), lambda b, i, k: (b, i, k)),
            pl.BlockSpec((IN, OUTp), lambda b, i, k: (0, 0)),
            pl.BlockSpec((1, OUTp), lambda b, i, k: (0, 0)),
        ]
        operands = (text_mm, adj_mm, weight_mm, bias2d)
        kernel_flops = (2 * B * n_i * N_pad * IN * OUTp    # text@W (per row tile)
                        + 2 * B * N_pad * N_pad * OUTp)    # adj@hidden
        kernel_bytes = (B * N_pad * N_pad * itm            # adj
                        + B * n_i * N_pad * IN * itm       # text tiles
                        + IN * OUTp * itm + OUTp * 4       # weight + bias
                        + B * N_pad * OUTp * 4)            # output

    cost = pl.CostEstimate(flops=kernel_flops,
                           transcendentals=B * N_pad,
                           bytes_accessed=kernel_bytes)

    out_padded = pl.pallas_call(
        kernel,
        out_shape=jax.ShapeDtypeStruct((B, N_pad, OUTp), f32),
        grid_spec=pltpu.PrefetchScalarGridSpec(
            num_scalar_prefetch=0,
            grid=grid,
            in_specs=in_specs,
            out_specs=pl.BlockSpec((pl.Squeezed(), tm, OUTp),
                                   lambda b, i, k: (b, i, 0)),
            scratch_shapes=[pltpu.VMEM((tm, 1), jnp.float32)],   # denom only
        ),
        compiler_params=pltpu.CompilerParams(
            dimension_semantics=("parallel", "parallel", "arbitrary"),
            vmem_limit_bytes=vmem_limit,
        ),
        cost_estimate=cost,
    )(*operands)

    # NOTE: if downstream can consume the padded (N_pad, OUTp) f32 layout this
    # slice (an extra HBM round-trip) can be dropped; padded rows then contain
    # the bias, not zeros.
    return out_padded[:, :N, :OUT]


def graph_convolution_ref(text, adj, weight, bias):
    hidden = jnp.matmul(text, weight)
    denom = jnp.sum(adj, axis=2, keepdims=True) + 1.0
    out = jnp.matmul(adj, hidden) / denom
    if bias is not None:
        out = out + bias
    return out


if __name__ == "__main__":
    key = jax.random.PRNGKey(0)

    def make_inputs(k, B, N, IN, OUT):
        k_text, k_adj, k_w, k_b = jax.random.split(k, 4)
        text = jax.random.normal(k_text, (B, N, IN), dtype=jnp.float32)
        # synthetic 0/1 adjacency with self-loops (values {0,1,2}: exact in bf16)
        adj = (jax.random.uniform(k_adj, (B, N, N)) > 0.5).astype(jnp.float32)
        adj = adj + jnp.eye(N, dtype=jnp.float32)[None]
        stdv = 1.0 / (OUT ** 0.5)
        weight = jax.random.uniform(k_w, (IN, OUT), minval=-stdv, maxval=stdv,
                                    dtype=jnp.float32)
        bias = jax.random.uniform(k_b, (OUT,), minval=-stdv, maxval=stdv,
                                  dtype=jnp.float32)
        return text, adj, weight, bias

    k1, k2, k3 = jax.random.split(key, 3)

    # Case 1: feature-small IN -> in-kernel recompute path (fast + precise).
    text, adj, weight, bias = make_inputs(k1, B=2, N=256, IN=16, OUT=32)
    ref = graph_convolution_ref(text, adj, weight, bias)
    out_fast = jax.block_until_ready(graph_convolution(text, adj, weight, bias))
    assert out_fast.shape == (2, 256, 32)
    assert jnp.allclose(out_fast, ref, atol=2e-2, rtol=2e-2)
    out_f32 = jax.block_until_ready(
        graph_convolution(text, adj, weight, bias, use_bf16_matmul=False))
    assert jnp.allclose(out_f32, ref, atol=1e-4, rtol=1e-4)

    # Case 2: large IN -> hidden hoisted into a single XLA matmul (fast path).
    text, adj, weight, bias = make_inputs(k2, B=2, N=256, IN=256, OUT=32)
    ref = graph_convolution_ref(text, adj, weight, bias)
    out_h = jax.block_until_ready(graph_convolution(text, adj, weight, bias))
    assert out_h.shape == (2, 256, 32)
    assert jnp.allclose(out_h, ref, atol=2e-2, rtol=2e-2)

    # Case 3: ragged N (padding) + B==1 (tm halved to keep >=2 parallel blocks).
    text, adj, weight, bias = make_inputs(k3, B=1, N=200, IN=16, OUT=32)
    ref = graph_convolution_ref(text, adj, weight, bias)
    out_p = jax.block_until_ready(
        graph_convolution(text, adj, weight, bias, use_bf16_matmul=False))
    assert out_p.shape == (1, 200, 32)
    assert jnp.allclose(out_p, ref, atol=1e-4, rtol=1e-4)

    print("KERNEL_OK")
</pallas_src>

<mosaic_0001>
module attributes {stable_mosaic.version = 11 : i64} {
  func.func @_gcn_kernel_recompute(%arg0: i32, %arg1: i32, %arg2: i32, %arg3: memref<1x256x16xbf16, #tpu.memory_space<vmem>>, %arg4: memref<1x256x256xbf16, #tpu.memory_space<vmem>>, %arg5: memref<16x128xbf16, #tpu.memory_space<vmem>>, %arg6: memref<1x128xf32, #tpu.memory_space<vmem>>, %arg7: memref<1x256x128xf32, #tpu.memory_space<vmem>>, %arg8: memref<256x1xf32, #tpu.memory_space<vmem>>) attributes {dimension_semantics = [#tpu.dimension_semantics<parallel>, #tpu.dimension_semantics<parallel>, #tpu.dimension_semantics<arbitrary>], iteration_bounds = array<i64: 2, 1, 1>, scalar_prefetch = 0 : i64, scratch_operands = 1 : i64, tpu.core_type = #tpu.core_type<tc>, window_params = [{transform_indices = @transform_0, window_bounds = array<i64: 1, 256, 16>}, {transform_indices = @transform_1, window_bounds = array<i64: 1, 256, 256>}, {pipeline_mode = #tpu.pipeline_mode<synchronous>, transform_indices = @transform_2, window_bounds = array<i64: 16, 128>}, {pipeline_mode = #tpu.pipeline_mode<synchronous>, transform_indices = @transform_3, window_bounds = array<i64: 1, 128>}, {transform_indices = @transform_4, window_bounds = array<i64: 1, 256, 128>}]} {
    %c0 = arith.constant 0 : index
    %c0_0 = arith.constant 0 : index
    %c0_1 = arith.constant 0 : index
    %0 = vector.load %arg3[%c0, %c0_0, %c0_1] : memref<1x256x16xbf16, #tpu.memory_space<vmem>>, vector<1x256x16xbf16>
    %1 = vector.shape_cast %0 : vector<1x256x16xbf16> to vector<256x16xbf16>
    %c0_2 = arith.constant 0 : index
    %c0_3 = arith.constant 0 : index
    %2 = vector.load %arg5[%c0_2, %c0_3] : memref<16x128xbf16, #tpu.memory_space<vmem>>, vector<16x128xbf16>
    %cst = arith.constant dense<0.000000e+00> : vector<256x128xf32>
    %3 = tpu.matmul %1, %2, %cst {dimension_numbers = #tpu.dot_dimension_numbers<[1], [0], [0], [1], [0, 0, 1, 1], [], []>} : vector<256x16xbf16>, vector<16x128xbf16>, vector<256x128xf32> -> vector<256x128xf32>
    %4 = arith.truncf %3 : vector<256x128xf32> to vector<256x128xbf16>
    %c0_4 = arith.constant 0 : index
    %c0_5 = arith.constant 0 : index
    %c0_6 = arith.constant 0 : index
    %5 = vector.load %arg4[%c0_4, %c0_5, %c0_6] : memref<1x256x256xbf16, #tpu.memory_space<vmem>>, vector<1x256x256xbf16>
    %6 = vector.shape_cast %5 : vector<1x256x256xbf16> to vector<256x256xbf16>
    %c0_i32 = arith.constant 0 : i32
    %7 = arith.cmpi eq, %arg2, %c0_i32 : i32
    %8 = arith.extui %7 : i1 to i32
    %c0_i32_7 = arith.constant 0 : i32
    %9 = arith.cmpi ne, %8, %c0_i32_7 : i32
    scf.if %9 {
      %cst_22 = arith.constant 0.000000e+00 : f32
      %26 = vector.broadcast %cst_22 : f32 to vector<256x128xf32>
      %c0_23 = arith.constant 0 : index
      %c0_24 = arith.constant 0 : index
      %c0_25 = arith.constant 0 : index
      %27 = vector.load %arg7[%c0_23, %c0_24, %c0_25] : memref<1x256x128xf32, #tpu.memory_space<vmem>>, vector<1x256x128xf32>
      %28 = vector.shape_cast %27 : vector<1x256x128xf32> to vector<256x128xf32>
      %29 = vector.shape_cast %26 : vector<256x128xf32> to vector<1x256x128xf32>
      tpu.vector_store %arg7[%c0_23, %c0_24, %c0_25], %29 {strides = array<i32>} : memref<1x256x128xf32, #tpu.memory_space<vmem>>, vector<1x256x128xf32>,
      %cst_26 = arith.constant 0.000000e+00 : f32
      %30 = vector.broadcast %cst_26 : f32 to vector<256x1xf32>
      %c0_27 = arith.constant 0 : index
      %c0_28 = arith.constant 0 : index
      %31 = vector.load %arg8[%c0_27, %c0_28] : memref<256x1xf32, #tpu.memory_space<vmem>>, vector<256x1xf32>
      tpu.vector_store %arg8[%c0_27, %c0_28], %30 {strides = array<i32>} : memref<256x1xf32, #tpu.memory_space<vmem>>, vector<256x1xf32>,
    } else {
    }
    %c0_8 = arith.constant 0 : index
    %c0_9 = arith.constant 0 : index
    %10 = vector.load %arg8[%c0_8, %c0_9] : memref<256x1xf32, #tpu.memory_space<vmem>>, vector<256x1xf32>
    %11 = arith.extf %6 : vector<256x256xbf16> to vector<256x256xf32>
    %cst_10 = arith.constant dense<0.000000e+00> : vector<256xf32>
    %12 = vector.multi_reduction <add>, %11, %cst_10 [1] : vector<256x256xf32> to vector<256xf32>
    %13 = vector.shape_cast %12 : vector<256xf32> to vector<256x1xf32>
    %14 = arith.addf %10, %13 : vector<256x1xf32>
    %c0_11 = arith.constant 0 : index
    %c0_12 = arith.constant 0 : index
    %15 = vector.load %arg8[%c0_11, %c0_12] : memref<256x1xf32, #tpu.memory_space<vmem>>, vector<256x1xf32>
    tpu.vector_store %arg8[%c0_11, %c0_12], %14 {strides = array<i32>} : memref<256x1xf32, #tpu.memory_space<vmem>>, vector<256x1xf32>,
    %c0_13 = arith.constant 0 : index
    %c0_14 = arith.constant 0 : index
    %c0_15 = arith.constant 0 : index
    %16 = vector.load %arg7[%c0_13, %c0_14, %c0_15] : memref<1x256x128xf32, #tpu.memory_space<vmem>>, vector<1x256x128xf32>
    %17 = vector.shape_cast %16 : vector<1x256x128xf32> to vector<256x128xf32>
    %cst_16 = arith.constant dense<0.000000e+00> : vector<256x128xf32>
    %18 = tpu.matmul %6, %4, %cst_16 {dimension_numbers = #tpu.dot_dimension_numbers<[1], [0], [0], [1], [0, 0, 1, 1], [], []>} : vector<256x256xbf16>, vector<256x128xbf16>, vector<256x128xf32> -> vector<256x128xf32>
    %19 = arith.addf %17, %18 : vector<256x128xf32>
    %c0_17 = arith.constant 0 : index
    %c0_18 = arith.constant 0 : index
    %c0_19 = arith.constant 0 : index
    %20 = vector.load %arg7[%c0_17, %c0_18, %c0_19] : memref<1x256x128xf32, #tpu.memory_space<vmem>>, vector<1x256x128xf32>
    %21 = vector.shape_cast %20 : vector<1x256x128xf32> to vector<256x128xf32>
    %22 = vector.shape_cast %19 : vector<256x128xf32> to vector<1x256x128xf32>
    tpu.vector_store %arg7[%c0_17, %c0_18, %c0_19], %22 {strides = array<i32>} : memref<1x256x128xf32, #tpu.memory_space<vmem>>, vector<1x256x128xf32>,
    %c0_i32_20 = arith.constant 0 : i32
    %23 = arith.cmpi eq, %arg2, %c0_i32_20 : i32
    %24 = arith.extui %23 : i1 to i32
    %c0_i32_21 = arith.constant 0 : i32
    %25 = arith.cmpi ne, %24, %c0_i32_21 : i32
    scf.if %25 {
      %c0_22 = arith.constant 0 : index
      %c0_23 = arith.constant 0 : index
      %26 = vector.load %arg8[%c0_22, %c0_23] : memref<256x1xf32, #tpu.memory_space<vmem>>, vector<256x1xf32>
      %cst_24 = arith.constant 1.000000e+00 : f32
      %27 = vector.broadcast %cst_24 : f32 to vector<256x1xf32>
      %28 = arith.addf %26, %27 : vector<256x1xf32>
      %29 = tpu.reciprocal %28 {approx = true} : vector<256x1xf32> -> vector<256x1xf32>
      %c0_25 = arith.constant 0 : index
      %c0_26 = arith.constant 0 : index
      %c0_27 = arith.constant 0 : index
      %30 = vector.load %arg7[%c0_25, %c0_26, %c0_27] : memref<1x256x128xf32, #tpu.memory_space<vmem>>, vector<1x256x128xf32>
      %31 = vector.shape_cast %30 : vector<1x256x128xf32> to vector<256x128xf32>
      %32 = vector.broadcast %29 : vector<256x1xf32> to vector<256x128xf32>
      %33 = arith.mulf %31, %32 : vector<256x128xf32>
      %c0_28 = arith.constant 0 : index
      %c0_29 = arith.constant 0 : index
      %34 = vector.load %arg6[%c0_28, %c0_29] : memref<1x128xf32, #tpu.memory_space<vmem>>, vector<1x128xf32>
      %35 = vector.broadcast %34 : vector<1x128xf32> to vector<256x128xf32>
      %36 = arith.addf %33, %35 : vector<256x128xf32>
      %c0_30 = arith.constant 0 : index
      %c0_31 = arith.constant 0 : index
      %c0_32 = arith.constant 0 : index
      %37 = vector.load %arg7[%c0_30, %c0_31, %c0_32] : memref<1x256x128xf32, #tpu.memory_space<vmem>>, vector<1x256x128xf32>
      %38 = vector.shape_cast %37 : vector<1x256x128xf32> to vector<256x128xf32>
      %39 = vector.shape_cast %36 : vector<256x128xf32> to vector<1x256x128xf32>
      tpu.vector_store %arg7[%c0_30, %c0_31, %c0_32], %39 {strides = array<i32>} : memref<1x256x128xf32, #tpu.memory_space<vmem>>, vector<1x256x128xf32>,
    } else {
    }
    return
  }
  func.func @transform_0(%arg0: i32, %arg1: i32, %arg2: i32) -> (i32, i32, i32) {
    %c0_i32 = arith.constant 0 : i32
    %c0_i32_0 = arith.constant 0 : i32
    return %arg0, %arg2, %c0_i32 : i32, i32, i32
  }
  func.func @transform_1(%arg0: i32, %arg1: i32, %arg2: i32) -> (i32, i32, i32) {
    %c0_i32 = arith.constant 0 : i32
    return %arg0, %arg1, %arg2 : i32, i32, i32
  }
  func.func @transform_2(%arg0: i32, %arg1: i32, %arg2: i32) -> (i32, i32) {
    %c0_i32 = arith.constant 0 : i32
    %c0_i32_0 = arith.constant 0 : i32
    %c0_i32_1 = arith.constant 0 : i32
    return %c0_i32, %c0_i32_0 : i32, i32
  }
  func.func @transform_3(%arg0: i32, %arg1: i32, %arg2: i32) -> (i32, i32) {
    %c0_i32 = arith.constant 0 : i32
    %c0_i32_0 = arith.constant 0 : i32
    %c0_i32_1 = arith.constant 0 : i32
    return %c0_i32, %c0_i32_0 : i32, i32
  }
  func.func @transform_4(%arg0: i32, %arg1: i32, %arg2: i32) -> (i32, i32, i32) {
    %c0_i32 = arith.constant 0 : i32
    %c0_i32_0 = arith.constant 0 : i32
    return %arg0, %arg1, %c0_i32 : i32, i32, i32
  }
}

</mosaic_0001>

<bundles_post_ra>
// kernel: tpu_custom_call.1
= control target key start
LH: loop header
LB: loop body
LE: loop exit
PB: predicated region body
PF: predicated region fallthrough
CT: control target
= control target key end

     0   :  { %9 = vsyncpa [#allocation4], 0  ;;  %s3063_s0 = inlined_call_operand.vmem [shape: bf16[2,256,16], index: 0, kind: input, shape index: {}]   ;;  %s3064_s1 = inlined_call_operand.hbm [shape: bf16[2,256,256], index: 1, kind: input, shape index: {}]   ;;  %s3065_s2 = inlined_call_operand.vmem [shape: bf16[16,128], index: 2, kind: input, shape index: {}]   ;;  %s3066_s3 = inlined_call_operand.vmem [shape: f32[1,128], index: 3, kind: input, shape index: {}]   ;;  %s3067_s4 = inlined_call_operand.hbm [shape: f32[2,256,128], index: 4, kind: output, shape index: {}]  }
   0x1   :  { %11 = vsyncpa [#allocation4 + $0x1], 0 }
   0x2   :  { %12 = vsyncpa [#allocation5], 0 }
   0x3   :  { %14 = vsyncpa [#allocation5 + $0x1], 0  ;;  %s2507_s15 = smov 0   ;;  %s2509_s16 = smov 0  }
   0x4   :  { %s2511_s17 = smov 0   ;;  %s2513_s18 = smov 0  }
   0x5   :  { %s2515_s19 = smov 0   ;;  %s2517_s20 = smov 0  }
   0x6 LB: > { %s1927_s21 = sadd.s32 4294967295, %s2472_s20   ;;  %s1928_s22 = sadd.s32 4294967294, %s2472_s20   ;;  %s2472_s20 = sphi %s2517_s20, %s20_s20   ;;  %s2468_s19 = sphi %s2515_s19, %s3078_s19   ;;  %s2464_s18 = sphi %s2513_s18, %s3077_s18   ;;  %s2460_s17 = sphi %s2511_s17, %s3076_s17   ;;  %s2456_s16 = sphi %s2509_s16, %s3075_s16   ;;  %s2452_s15 = sphi %s2507_s15, %s3074_s15  }
   0x7   : > { %s39_s23 = sadd.s32 1, %s2468_s19  ;;  %s78_s24 = sadd.s32 1, %s2460_s17 }
   0x8   : > { %p41_p0 = scmp.ge.s32.totalorder %s39_s23, 2  ;;  %p85_p1 = scmp.ne.s32.totalorder %s2460_s17, %s2456_s16 }
   0x9   : > { %p86_p2 = scmp.eq.s32.totalorder %s2472_s20, 0  ;;  %p91_p3 = scmp.ne.s32.totalorder %s2456_s16, %s2452_s15 }
   0xa   : > { %s3080_s23 = smov (%p41_p0, %s39_s23), 0  ;;  %p92_p5 = scmp.eq.s32.totalorder %s1927_s21, 0 }
   0xb   : > { %p2548_p4 = por %p86_p2, %p85_p1  ;;  %s71_s26 = ssub.s32 %s2468_s19, %s3080_s23 }
   0xc   : > { %p159_p6 = scmp.eq.s32.totalorder %s1927_s21, 1  ;;  %p76_p7 = scmp.eq.s32.totalorder %s71_s26, 0 }
   0xd   : > { %p2554_p8 = por %p92_p5, %p91_p3  ;;  %p165_p10 = scmp.eq.s32.totalorder %s1928_s22, 1 }
   0xe   : > { %p2558_p9 = por %p159_p6, %p85_p1  ;;  %p2204_p13 = scmp.lt.s32.totalorder %s2472_s20, 2 }
   0xf   : > { %s2563_s29 = scalar_select %p76_p7, %s2460_s17, %s78_s24  }
  0x10   : > { %p2565_p11 = por %p165_p10, %p91_p3  ;;  %s204_s5 = sand.u32 1, %s2460_s17  }
  0x11   : > { %s1931_s6 = sshll.u32 %s204_s5, 8  ;;  %s2010_s7 = sshll.u32 %s2468_s19, 12 }
  0x12   : > { %s219_s10 = scalar_lea.hbm %s3064_s1, %s2010_s7  ;;  %s208_s11 = scalar_lea.vmem [#allocation3], %s1931_s6 }
  0x13   : > { %s220_s12 = sshll.u32 %s208_s11, 4  ;;  %p2578_p0 = pnand %p2204_p13, %p2548_p4  ;;  %s221_s12 = int_to_ptr.vmem [resolvable:$true] %s220_s12 }
  0x14   : > { %p1934_p1 = scmp.ge.s32.totalorder %s2472_s20, 1  ;;  %s205_s14 = scalar_lea.sflag [#allocation4], %s204_s5 }
  0x15   : > { %p2366_p2 = pneg %p2578_p0  ;;  %s2377_s21 = scalar_lea.vmem %s221_s12, 4096 }
  0x16   : > { %p2378_p3 = scmp.ne.s32.totalorder %s221_s12, %s2377_s21  ;;  %s2474_s22 = smov [#allocation3]  }
  0x17   : > { %s2382_s24 = sshll.u32 %s2474_s22, 4  ;;  %s2383_s24 = int_to_ptr.vmem [resolvable:$false] %s2382_s24 }
  0x18   : > { %p2380_p5 = pnand %p2378_p3, %p2366_p2  ;;  %s2384_s26 = scalar_lea.vmem %s2383_s24, 8192 }
  0x19   : > { %p2385_p7 = scmp.lt.s32.totalorder %s221_s12, %s2383_s24  ;;  %p2386_p10 = scmp.lt.s32.totalorder %s2384_s26, %s2377_s21 }
  0x1a   : > { %p2381_p6 = pneg %p2380_p5 }
  0x1b   : > { %p2387_p12 = por %p2386_p10, %p2385_p7 }
  0x1d   : > { %p2388_p4 = pnand %p2387_p12, %p2381_p6 }
  0x1f   : > { %2391 = shalt.err (!%p2388_p4)
}
  0x20   : > { %s2475_s25 = smov 128   ;;  %s2476_s5 = smov 8  }
  0x21   : > { %2199 = dma.hbm_to_vmem [thread:$0]  (!%p2578_p0), %s219_s10, 4096, %s221_s12, %s205_s14, %s2475_s25, %s2475_s25, %s2476_s5  }
  0x22   : > { %p228_p13 = scmp.lt.s32.totalorder %s2472_s20, 3 }
  0x24   : > { %p229_p2 = pnand %p1934_p1, %p228_p13 }
  0x25   : > { %s2591_s6 = sand.u32 (!%p229_p2), 1, %s2456_s16  }
  0x26   : > { %232 = sbr.rel (%p229_p2) target bundleno = 638 (0x27e), region = 36  ;;  %s1935_s7 = sshll.u32 (!%p229_p2), %s2591_s6, 8 }
  0x27   : > { %s235_s8 = scalar_lea.sflag (!%p229_p2), [#allocation4], %s2591_s6  ;;  %s2597_s9 = scalar_lea.vmem (!%p229_p2), [#allocation3], %s1935_s7 }
  0x2b   : > { %2443 = dma.done.wait (%p2554_p8), %s235_s8, 4096  }
  0x2c   : > { %2445 = vsyncadd (%p2554_p8), %s235_s8, 4294963200  ;;  %p273_p12 = scmp.lt.s32.totalorder %s2464_s18, 1  ;;  %v2262_v0 = vld [vmem:[%s3065_s2] sm:$0xff]   ;;  %vm406_vm0 = vcmask 130048   ;;  %v2627_v7 = vld [vmem:[%s2597_s9 + $0x8] sm:$0xff]  ;;  %vm700_vm1 = vcmask 7168  }
  0x2d   : > { %2142 = vmatprep.subr.bf16.mxu0 %v2262_v0  ;;  %v2624_v6 = vld [vmem:[%s2597_s9] sm:$0xff]  ;;  %v634_v8 = vld [vmem:[%s2597_s9 + $0x10] sm:$0xff]  ;;  %v767_v12 = vunpack.c.l.bf16 %v2627_v7  ;;  %v768_v13 = vunpack.c.h.bf16 %v2627_v7  ;;  %v635_v14 = vld [vmem:[%s2597_s9 + $0x18] sm:$0xff]  ;;  %s2938_s26 = scalar_lea.vmem [#allocation6], %s1935_s7  ;;  %s2012_s25 = sshll.u32 %s2464_s18, 12 }
  0x2e   : > { %s274_s10 = scalar_select %p273_p12, %s2464_s18, 1  ;;  %2143 = vmatpush3.bf16.msra.mxu0 %v2262_v0  ;;  %v765_v10 = vunpack.c.l.bf16 %v2624_v6  ;;  %v766_v11 = vunpack.c.h.bf16 %v2624_v6  ;;  %v769_v16 = vunpack.c.l.bf16 %v634_v8  ;;  %v770_v17 = vunpack.c.h.bf16 %v634_v8  ;;  %v636_v19 = vld [vmem:[%s2597_s9 + $0x20] sm:$0xff]  ;;  %v637_v22 = vld [vmem:[%s2597_s9 + $0x28] sm:$0xff]  ;;  %v638_v30 = vld [vmem:[%s2597_s9 + $0x30] sm:$0xff] }
  0x2f   : > { %v771_v18 = vunpack.c.l.bf16 %v635_v14  ;;  %v772_v21 = vunpack.c.h.bf16 %v635_v14  ;;  %v832_v24 = vadd.f32 %v768_v13, %v767_v12  ;;  %v773_v25 = vunpack.c.l.bf16 %v636_v19  ;;  %v639_v31 = vld [vmem:[%s2597_s9 + $0x38] sm:$0xff]  ;;  %v640_v40 = vld [vmem:[%s2597_s9 + $0x40] sm:$0xff]  ;;  %v2649_v45 = vld [vmem:[%s2597_s9 + $0x50] sm:$0xff]  ;;  %s1817_s5 = sshll.u32 %s2938_s26, 4  ;;  %s2479_s18 = smov [#allocation6]   ;;  %s3013_s5 = int_to_ptr.vmem [resolvable:$true] %s1817_s5 }
  0x30   : > { %s2011_s11 = sshll.u32 %s274_s10, 7  ;;  %v829_v20 = vadd.f32 %v766_v11, %v765_v10  ;;  %v835_v23 = vadd.f32 %v770_v17, %v769_v16  ;;  %v774_v26 = vunpack.c.h.bf16 %v636_v19  ;;  %v775_v28 = vunpack.c.l.bf16 %v637_v22  ;;  %v644_v51 = vld [vmem:[%s2597_s9 + $0x60] sm:$0xff]  ;;  %v646_v55 = vld [vmem:[%s2597_s9 + $0x70] sm:$0xff]  ;;  %v641_v11 = vld [vmem:[%s2597_s9 + $0x48] sm:$0xff]  ;;  %s1802_s10 = scalar_lea.sflag [#allocation5], %s2591_s6 }
  0x31   : > { %s2608_s14 = scalar_lea.vmem %s3063_s0, %s2011_s11  ;;  %v838_v27 = vadd.f32 %v772_v21, %v771_v18  ;;  %v776_v29 = vunpack.c.h.bf16 %v637_v22  ;;  %v777_v34 = vunpack.c.l.bf16 %v638_v30  ;;  %v778_v35 = vunpack.c.h.bf16 %v638_v30  ;;  %v648_v61 = vld [vmem:[%s2597_s9 + $0x80] sm:$0xff]  ;;  %v2674_v19 = vld [vmem:[%s2597_s9 + $0x58] sm:$0xff]  ;;  %s2392_s11 = scalar_lea.vmem %s3013_s5, 4096 }
  0x32   : > { %v2263_v1 = vld [vmem:[%s2608_s14] sm:$0xff]   ;;  %v2264_v2 = vld [vmem:[%s2608_s14 + $0x8] sm:$0xff]   ;;  %v2265_v3 = vld [vmem:[%s2608_s14 + $0x10] sm:$0xff]   ;;  %830 = vadd.xlane.f32.xlu0 %v829_v20  ;;  %836 = vadd.xlane.f32.xlu1 %v835_v23  ;;  %v841_v33 = vadd.f32 %v774_v26, %v773_v25  ;;  %v779_v38 = vunpack.c.l.bf16 %v639_v31  ;;  %v780_v39 = vunpack.c.h.bf16 %v639_v31  ;;  %v781_v42 = vunpack.c.l.bf16 %v640_v40  ;;  %p2393_p8 = scmp.ne.s32.totalorder %s3013_s5, %s2392_s11  ;;  %s2396_s12 = sshll.u32 %s2479_s18, 4  ;;  %s2397_s12 = int_to_ptr.vmem [resolvable:$false] %s2396_s12 }
  0x33   : > { %2144 = vmatprep.mubr.msk.bf16.mxu0 %vm406_vm0, %v2263_v1  ;;  %v2266_v4 = vld [vmem:[%s2608_s14 + $0x18] sm:$0xff]   ;;  %v2267_v5 = vld [vmem:[%s2608_s14 + $0x20] sm:$0xff]   ;;  %v2268_v9 = vld [vmem:[%s2608_s14 + $0x28] sm:$0xff]   ;;  %v844_v37 = vadd.f32 %v776_v29, %v775_v28  ;;  %v847_v41 = vadd.f32 %v778_v35, %v777_v34  ;;  %v782_v43 = vunpack.c.h.bf16 %v640_v40  ;;  %v785_v48 = vunpack.c.l.bf16 %v2649_v45  ;;  %s2398_s13 = scalar_lea.vmem %s2397_s12, 8192  ;;  %p2399_p3 = scmp.lt.s32.totalorder %s3013_s5, %s2397_s12 }
  0x34   : > { %2145 = vmatmul.mubr.msk.bf16.vlgmr.msra.gmra.mxu0 %vm406_vm0, %v2264_v2  ;;  %v2269_v15 = vld [vmem:[%s2608_s14 + $0x30] sm:$0xff]   ;;  %v2270_v32 = vld [vmem:[%s2608_s14 + $0x38] sm:$0xff]   ;;  %v2271_v36 = vld [vmem:[%s2608_s14 + $0x40] sm:$0xff]   ;;  %v850_v44 = vadd.f32 %v780_v39, %v779_v38  ;;  %v786_v49 = vunpack.c.h.bf16 %v2649_v45  ;;  %v789_v53 = vunpack.c.l.bf16 %v644_v51  ;;  %v790_v54 = vunpack.c.h.bf16 %v644_v51  ;;  %p2394_p0 = pnand %p2393_p8, %p2558_p9  ;;  %p2400_p5 = scmp.lt.s32.totalorder %s2398_s13, %s2392_s11 }
  0x35   : > { %2148 = vmatprep.mubr.msk.bf16.mxu0 %vm406_vm0, %v2265_v3  ;;  %v2272_v46 = vld [vmem:[%s2608_s14 + $0x48] sm:$0xff]   ;;  %v853_v47 = vadd.f32 %v782_v43, %v781_v42  ;;  %v2273_v50 = vld [vmem:[%s2608_s14 + $0x50] sm:$0xff]   ;;  %v2274_v56 = vld [vmem:[%s2608_s14 + $0x58] sm:$0xff]   ;;  %v793_v58 = vunpack.c.l.bf16 %v646_v55  ;;  %v794_v59 = vunpack.c.h.bf16 %v646_v55  ;;  %v797_v63 = vunpack.c.l.bf16 %v648_v61 }
  0x36   : > { %833 = vadd.xlane.f32.xlu0 %v832_v24  ;;  %839 = vadd.xlane.f32.xlu1 %v838_v27  ;;  %v859_v52 = vadd.f32 %v786_v49, %v785_v48  ;;  %v865_v57 = vadd.f32 %v790_v54, %v789_v53  ;;  %v2275_v60 = vld [vmem:[%s2608_s14 + $0x60] sm:$0xff]   ;;  %v798_v0 = vunpack.c.h.bf16 %v648_v61  ;;  %v2276_v1 = vld [vmem:[%s2608_s14 + $0x68] sm:$0xff]   ;;  %v2277_v3 = vld [vmem:[%s2608_s14 + $0x70] sm:$0xff]   ;;  %v783_v13 = vunpack.c.l.bf16 %v641_v11  ;;  %p2395_p1 = pneg %p2394_p0  ;;  %p2401_p6 = por %p2400_p5, %p2399_p3 }
  0x37   : > { %v871_v62 = vadd.f32 %v794_v59, %v793_v58  ;;  %v652_v12 = vld [vmem:[%s2597_s9 + $0xa0] sm:$0xff]  ;;  %v784_v14 = vunpack.c.h.bf16 %v641_v11  ;;  %v654_v20 = vld [vmem:[%s2597_s9 + $0xb0] sm:$0xff]  ;;  %v787_v21 = vunpack.c.l.bf16 %v2674_v19  ;;  %v788_v22 = vunpack.c.h.bf16 %v2674_v19  ;;  %v2680_v27 = vld [vmem:[%s2597_s9 + $0x68] sm:$0xff] }
  0x38   : > { %v877_v2 = vadd.f32 %v798_v0, %v797_v63  ;;  %v806_v16 = vunpack.c.h.bf16 %v652_v12  ;;  %v809_v23 = vunpack.c.l.bf16 %v654_v20  ;;  %v810_v24 = vunpack.c.h.bf16 %v654_v20  ;;  %v656_v28 = vld [vmem:[%s2597_s9 + $0xc0] sm:$0xff]  ;;  %v2686_v35 = vld [vmem:[%s2597_s9 + $0x78] sm:$0xff]  ;;  %v2692_v43 = vld [vmem:[%s2597_s9 + $0x88] sm:$0xff]  ;;  %p2402_p7 = pnand %p2401_p6, %p2395_p1 }
  0x39   : > { %v856_v17 = vadd.f32 %v784_v14, %v783_v13  ;;  %v862_v25 = vadd.f32 %v788_v22, %v787_v21  ;;  %v791_v29 = vunpack.c.l.bf16 %v2680_v27  ;;  %v792_v30 = vunpack.c.h.bf16 %v2680_v27  ;;  %v2705_v53 = vld [vmem:[%s2597_s9 + $0xf0] sm:$0xff]  ;;  %v2717_v0 = vld [vmem:[%s2597_s9 + $0xb8] sm:$0xff]  ;;  %v2732_v14 = vld [vmem:[%s2597_s9 + $0xe8] sm:$0xff] }
  0x3a   : > { %842 = vadd.xlane.f32.xlu0 %v841_v33  ;;  %845 = vadd.xlane.f32.xlu1 %v844_v37  ;;  %v895_v26 = vadd.f32 %v810_v24, %v809_v23  ;;  %v813_v31 = vunpack.c.l.bf16 %v656_v28  ;;  %v795_v37 = vunpack.c.l.bf16 %v2686_v35  ;;  %v796_v38 = vunpack.c.h.bf16 %v2686_v35 }
  0x3b   : > { %v868_v33 = vadd.f32 %v792_v30, %v791_v29  ;;  %v2477_v23 = vmov 0.0  }
  0x3c   : > { %2149 = vmatmul.mubr.msk.bf16.gmra.mxu0 %vm406_vm0, %v2266_v4  ;;  %v2278_v4 = vld [vmem:[%s2608_s14 + $0x78] sm:$0xff]   ;;  %701 = vst.msk [vmem:[#allocation2] sm:$0xff] %vm700_vm1, %v2477_v23  ;;  %702 = vst.msk [vmem:[#allocation2 + $0x8] sm:$0xff] %vm700_vm1, %v2477_v23 }
  0x3d   : > { %2152 = vmatprep.mubr.msk.bf16.mxu0 %vm406_vm0, %v2267_v5  ;;  %v650_v5 = vld [vmem:[%s2597_s9 + $0x90] sm:$0xff]  ;;  %703 = vst.msk [vmem:[#allocation2 + $0x10] sm:$0xff] %vm700_vm1, %v2477_v23  ;;  %704 = vst.msk [vmem:[#allocation2 + $0x18] sm:$0xff] %vm700_vm1, %v2477_v23 }
  0x3e   : > { %848 = vadd.xlane.f32.xlu0 %v847_v41  ;;  %851 = vadd.xlane.f32.xlu1 %v850_v44  ;;  %v801_v8 = vunpack.c.l.bf16 %v650_v5  ;;  %v874_v41 = vadd.f32 %v796_v38, %v795_v37  ;;  %v2695_v44 = vld [vmem:[%s2597_s9 + $0xe0] sm:$0xff]  ;;  %705 = vst.msk [vmem:[#allocation2 + $0x20] sm:$0xff] %vm700_vm1, %v2477_v23  ;;  %706 = vst.msk [vmem:[#allocation2 + $0x28] sm:$0xff] %vm700_vm1, %v2477_v23 }
  0x3f   : > { %v821_v48 = vunpack.c.l.bf16 %v2695_v44  ;;  %v822_v49 = vunpack.c.h.bf16 %v2695_v44  ;;  %707 = vst.msk [vmem:[#allocation2 + $0x30] sm:$0xff] %vm700_vm1, %v2477_v23  ;;  %708 = vst.msk [vmem:[#allocation2 + $0x38] sm:$0xff] %vm700_vm1, %v2477_v23 }
  0x40   : > { %709 = vst.msk [vmem:[#allocation2 + $0x40] sm:$0xff] %vm700_vm1, %v2477_v23  ;;  %710 = vst.msk [vmem:[#allocation2 + $0x48] sm:$0xff] %vm700_vm1, %v2477_v23 }
  0x41   : > { %v913_v51 = vadd.f32 %v822_v49, %v821_v48  ;;  %711 = vst.msk [vmem:[#allocation2 + $0x50] sm:$0xff] %vm700_vm1, %v2477_v23  ;;  %712 = vst.msk [vmem:[#allocation2 + $0x58] sm:$0xff] %vm700_vm1, %v2477_v23 }
  0x42   : > { %854 = vadd.xlane.f32.xlu0 %v853_v47  ;;  %857 = vadd.xlane.f32.xlu1 %v856_v17  ;;  %v800_v47 = vunpack.c.h.bf16 %v2692_v43  ;;  %713 = vst.msk [vmem:[#allocation2 + $0x60] sm:$0xff] %vm700_vm1, %v2477_v23  ;;  %714 = vst.msk [vmem:[#allocation2 + $0x68] sm:$0xff] %vm700_vm1, %v2477_v23 }
  0x43   : > { %715 = vst.msk [vmem:[#allocation2 + $0x70] sm:$0xff] %vm700_vm1, %v2477_v23  ;;  %716 = vst.msk [vmem:[#allocation2 + $0x78] sm:$0xff] %vm700_vm1, %v2477_v23  ;;  %v733_v24 = vld [vmem:[#allocation2] sm:$0xff]  ;;  %v734_v30 = vld [vmem:[#allocation2 + $0x8] sm:$0xff] }
  0x44   : > { %2153 = vmatmul.mubr.msk.bf16.gmra.mxu0 %vm406_vm0, %v2268_v9  ;;  %v802_v9 = vunpack.c.h.bf16 %v650_v5  ;;  %717 = vst.msk [vmem:[#allocation2 + $0x80] sm:$0xff] %vm700_vm1, %v2477_v23  ;;  %718 = vst.msk [vmem:[#allocation2 + $0x88] sm:$0xff] %vm700_vm1, %v2477_v23 }
  0x45   : > { %2156 = vmatprep.mubr.msk.bf16.mxu0 %vm406_vm0, %v2269_v15  ;;  %v805_v15 = vunpack.c.l.bf16 %v652_v12  ;;  %719 = vst.msk [vmem:[#allocation2 + $0x90] sm:$0xff] %vm700_vm1, %v2477_v23  ;;  %720 = vst.msk [vmem:[#allocation2 + $0x98] sm:$0xff] %vm700_vm1, %v2477_v23 }
  0x46   : > { %860 = vadd.xlane.f32.xlu0 %v859_v52  ;;  %v883_v10 = vadd.f32 %v802_v9, %v801_v8  ;;  %863 = vadd.xlane.f32.xlu1 %v862_v25  ;;  %v2702_v52 = vld [vmem:[%s2597_s9 + $0x98] sm:$0xff]  ;;  %721 = vst.msk [vmem:[#allocation2 + $0xa0] sm:$0xff] %vm700_vm1, %v2477_v23  ;;  %722 = vst.msk [vmem:[#allocation2 + $0xa8] sm:$0xff] %vm700_vm1, %v2477_v23  ;;  %v735_v25 = vld [vmem:[#allocation2 + $0x10] sm:$0xff] }
  0x47   : > { %v889_v18 = vadd.f32 %v806_v16, %v805_v15  ;;  %v803_v54 = vunpack.c.l.bf16 %v2702_v52  ;;  %v804_v55 = vunpack.c.h.bf16 %v2702_v52  ;;  %v823_v15 = vunpack.c.l.bf16 %v2732_v14  ;;  %723 = vst.msk [vmem:[#allocation2 + $0xb0] sm:$0xff] %vm700_vm1, %v2477_v23  ;;  %724 = vst.msk [vmem:[#allocation2 + $0xb8] sm:$0xff] %vm700_vm1, %v2477_v23 }
  0x48   : > { %v824_v16 = vunpack.c.h.bf16 %v2732_v14  ;;  %725 = vst.msk [vmem:[#allocation2 + $0xc0] sm:$0xff] %vm700_vm1, %v2477_v23  ;;  %726 = vst.msk [vmem:[#allocation2 + $0xc8] sm:$0xff] %vm700_vm1, %v2477_v23 }
  0x49   : > { %v886_v58 = vadd.f32 %v804_v55, %v803_v54  ;;  %727 = vst.msk [vmem:[#allocation2 + $0xd0] sm:$0xff] %vm700_vm1, %v2477_v23  ;;  %728 = vst.msk [vmem:[#allocation2 + $0xd8] sm:$0xff] %vm700_vm1, %v2477_v23 }
  0x4a   : > { %866 = vadd.xlane.f32.xlu0 %v865_v57  ;;  %869 = vadd.xlane.f32.xlu1 %v868_v33  ;;  %v826_v57 = vunpack.c.h.bf16 %v2705_v53  ;;  %v916_v17 = vadd.f32 %v824_v16, %v823_v15  ;;  %729 = vst.msk [vmem:[#allocation2 + $0xe0] sm:$0xff] %vm700_vm1, %v2477_v23  ;;  %730 = vst.msk [vmem:[#allocation2 + $0xe8] sm:$0xff] %vm700_vm1, %v2477_v23  ;;  %v1983_v33 = vcombine.high %v2649_v45, %v2674_v19  ;;  %v745_v16 = vld [vmem:[#allocation2 + $0x60] sm:$0xff] }
  0x4b   : > { %731 = vst.msk [vmem:[#allocation2 + $0xf0] sm:$0xff] %vm700_vm1, %v2477_v23  ;;  %732 = vst.msk [vmem:[#allocation2 + $0xf8] sm:$0xff] %vm700_vm1, %v2477_v23 }
  0x4c   : > { %2157 = vmatmul.mubr.msk.bf16.gmra.mxu0 %vm406_vm0, %v2270_v32  ;;  %v814_v32 = vunpack.c.h.bf16 %v656_v28  ;;  %1254 = vmatprep.mubr.bf16.mxu1 %v1983_v33 }
  0x4d   : > { %2160 = vmatprep.mubr.msk.bf16.mxu0 %vm406_vm0, %v2271_v36  ;;  %v658_v36 = vld [vmem:[%s2597_s9 + $0xd0] sm:$0xff] }
  0x4e   : > { %872 = vadd.xlane.f32.xlu0 %v871_v62  ;;  %v901_v34 = vadd.f32 %v814_v32, %v813_v31  ;;  %v817_v39 = vunpack.c.l.bf16 %v658_v36  ;;  %v818_v40 = vunpack.c.h.bf16 %v658_v36  ;;  %875 = vadd.xlane.f32.xlu1 %v874_v41  ;;  %v1973_v32 = vcombine.high %v2624_v6, %v2627_v7  ;;  %v738_v6 = vld [vmem:[#allocation2 + $0x28] sm:$0xff] }
  0x50   : > { %v907_v42 = vadd.f32 %v818_v40, %v817_v39  ;;  %v737_v40 = vld [vmem:[#allocation2 + $0x20] sm:$0xff] }
  0x52   : > { %878 = vadd.xlane.f32.xlu0 %v877_v2  ;;  %v812_v2 = vunpack.c.h.bf16 %v2717_v0 }
  0x54   : > { %2161 = vmatmul.mubr.msk.bf16.gmra.mxu0 %vm406_vm0, %v2272_v46  ;;  %v799_v46 = vunpack.c.l.bf16 %v2692_v43 }
  0x55   : > { %2164 = vmatprep.mubr.msk.bf16.mxu0 %vm406_vm0, %v2273_v50 }
  0x56   : > { %884 = vadd.xlane.f32.xlu0 %v883_v10  ;;  %v880_v50 = vadd.f32 %v800_v47, %v799_v46  ;;  %v2727_v10 = vld [vmem:[%s2597_s9 + $0xd8] sm:$0xff]  ;;  %v739_v47 = vld [vmem:[#allocation2 + $0x30] sm:$0xff] }
  0x57   : > { %v819_v11 = vunpack.c.l.bf16 %v2727_v10  ;;  %v820_v12 = vunpack.c.h.bf16 %v2727_v10 }
  0x58   : > { %881 = vadd.xlane.f32.xlu1 %v880_v50 }
  0x59   : > { %v910_v13 = vadd.f32 %v820_v12, %v819_v11 }
  0x5a   : > { %890 = vadd.xlane.f32.xlu0 %v889_v18  ;;  %v2737_v18 = vld [vmem:[%s2597_s9 + $0xf8] sm:$0xff] }
  0x5b   : > { %v827_v20 = vunpack.c.l.bf16 %v2737_v18  ;;  %v828_v21 = vunpack.c.h.bf16 %v2737_v18 }
  0x5c   : > { %2165 = vmatmul.mubr.msk.bf16.gmra.mxu0 %vm406_vm0, %v2274_v56  ;;  %v825_v56 = vunpack.c.l.bf16 %v2705_v53  ;;  %887 = vadd.xlane.f32.xlu1 %v886_v58 }
  0x5d   : > { %2168 = vmatprep.mubr.msk.bf16.mxu0 %vm406_vm0, %v2275_v60  ;;  %v2712_v60 = vld [vmem:[%s2597_s9 + $0xa8] sm:$0xff]  ;;  %v922_v22 = vadd.f32 %v828_v21, %v827_v20 }
  0x5e   : > { %896 = vadd.xlane.f32.xlu0 %v895_v26  ;;  %v919_v59 = vadd.f32 %v826_v57, %v825_v56  ;;  %v807_v61 = vunpack.c.l.bf16 %v2712_v60  ;;  %v808_v62 = vunpack.c.h.bf16 %v2712_v60  ;;  %v740_v56 = vld [vmem:[#allocation2 + $0x38] sm:$0xff] }
  0x60   : > { %v892_v63 = vadd.f32 %v808_v62, %v807_v61  ;;  %v2478_v61 = vmov 0  }
  0x61   : > { %2261 = vset.pattern.permute.xlu1 %v2478_v61  ;;  %2260 = vset.pattern.permute.xlu0 %v2478_v61 }
  0x62   : > { %902 = vadd.xlane.f32.xlu0 %v901_v34  ;;  %893 = vadd.xlane.f32.xlu1 %v892_v63  ;;  %v736_v34 = vld [vmem:[#allocation2 + $0x18] sm:$0xff]  ;;  %v741_v63 = vld [vmem:[#allocation2 + $0x40] sm:$0xff] }
  0x64   : > { %2169 = vmatmul.mubr.msk.bf16.gmra.mxu0 %vm406_vm0, %v2276_v1  ;;  %v811_v1 = vunpack.c.l.bf16 %v2717_v0 }
  0x65   : > { %2172 = vmatprep.mubr.msk.bf16.mxu0 %vm406_vm0, %v2277_v3 }
  0x66   : > { %908 = vadd.xlane.f32.xlu0 %v907_v42  ;;  %v898_v3 = vadd.f32 %v812_v2, %v811_v1 }
  0x68   : > { %899 = vadd.xlane.f32.xlu1 %v898_v3 }
  0x6a   : > { %914 = vadd.xlane.f32.xlu0 %v913_v51 }
  0x6c   : > { %2173 = vmatmul.mubr.msk.bf16.gmra.mxu0 %vm406_vm0, %v2278_v4  ;;  %v2722_v4 = vld [vmem:[%s2597_s9 + $0xc8] sm:$0xff] }
  0x6d   : > { %v815_v5 = vunpack.c.l.bf16 %v2722_v4  ;;  %v816_v8 = vunpack.c.h.bf16 %v2722_v4  ;;  %1214 = vmatprep.mubr.bf16.mxu0 %v1973_v32 }
  0x6e   : > { %920 = vadd.xlane.f32.xlu0 %v919_v59 }
  0x6f   : > { %v904_v9 = vadd.f32 %v816_v8, %v815_v5  ;;  %v743_v8 = vld [vmem:[#allocation2 + $0x50] sm:$0xff] }
  0x71   : > { %905 = vadd.xlane.f32.xlu1 %v904_v9 }
  0x75   : > { %911 = vadd.xlane.f32.xlu1 %v910_v13 }
  0x79   : > { %917 = vadd.xlane.f32.xlu1 %v916_v17 }
  0x7d   : > { %923 = vadd.xlane.f32.xlu1 %v922_v22 }
  0xbb   : > { %v831_v26 = vpop.xlane.xlu0 %830  ;;  %v837_v29 = vpop.xlane.xlu1 %836 }
  0xbc   : > { %v925_v28 = vadd.f32 %v831_v26, %v733_v24  ;;  %v927_v31 = vadd.f32 %v837_v29, %v735_v25  ;;  %v747_v24 = vld [vmem:[#allocation2 + $0x70] sm:$0xff] }
  0xbe   : > { %958 = vst.msk [vmem:[#allocation2] sm:$0xff] %vm700_vm1, %v925_v28  ;;  %960 = vst.msk [vmem:[#allocation2 + $0x10] sm:$0xff] %vm700_vm1, %v927_v31  ;;  %v749_v31 = vld [vmem:[#allocation2 + $0x80] sm:$0xff] }
  0xbf   : > { %v834_v36 = vpop.xlane.xlu0 %833  ;;  %v840_v38 = vpop.xlane.xlu1 %839 }
  0xc0   : > { %v926_v37 = vadd.f32 %v834_v36, %v734_v30  ;;  %v928_v39 = vadd.f32 %v840_v38, %v736_v34 }
  0xc2   : > { %959 = vst.msk [vmem:[#allocation2 + $0x8] sm:$0xff] %vm700_vm1, %v926_v37  ;;  %961 = vst.msk [vmem:[#allocation2 + $0x18] sm:$0xff] %vm700_vm1, %v928_v39 }
  0xc3   : > { %v843_v41 = vpop.xlane.xlu0 %842  ;;  %v846_v7 = vpop.xlane.xlu1 %845 }
  0xc4   : > { %v929_v42 = vadd.f32 %v843_v41, %v737_v40  ;;  %v930_v45 = vadd.f32 %v846_v7, %v738_v6  ;;  %v751_v40 = vld [vmem:[#allocation2 + $0x90] sm:$0xff] }
  0xc5   : > { %v1412_v46 = vld [vmem:[#allocation2 + $0x10] sm:$0xff] }
  0xc6   : > { %962 = vst.msk [vmem:[#allocation2 + $0x20] sm:$0xff] %vm700_vm1, %v929_v42  ;;  %963 = vst.msk [vmem:[#allocation2 + $0x28] sm:$0xff] %vm700_vm1, %v930_v45  ;;  %v1444_v54 = vadd.f32 1.0, %v1412_v46 }
  0xc7   : > { %v849_v48 = vpop.xlane.xlu0 %848  ;;  %v852_v57 = vpop.xlane.xlu1 %851 }
  0xc8   : > { %v931_v50 = vadd.f32 %v849_v48, %v739_v47  ;;  %v932_v58 = vadd.f32 %v852_v57, %v740_v56 }
  0xc9   : > { %v1411_v49 = vld [vmem:[#allocation2 + $0x8] sm:$0xff]  ;;  %v1413_v55 = vld [vmem:[#allocation2 + $0x18] sm:$0xff] }
  0xca   : > { %v1443_v51 = vadd.f32 1.0, %v1411_v49  ;;  %964 = vst.msk [vmem:[#allocation2 + $0x30] sm:$0xff] %vm700_vm1, %v931_v50  ;;  %v1445_v59 = vadd.f32 1.0, %v1413_v55  ;;  %965 = vst.msk [vmem:[#allocation2 + $0x38] sm:$0xff] %vm700_vm1, %v932_v58  ;;  %v742_v50 = vld [vmem:[#allocation2 + $0x48] sm:$0xff] }
  0xcb   : > { %v855_v1 = vpop.xlane.xlu0 %854 }
  0xcc   : > { %2280 = vrcp.f32 %v1443_v51  ;;  %v933_v2 = vadd.f32 %v855_v1, %v741_v63  ;;  %v858_v51 = vpop.xlane.xlu1 %857  ;;  %v744_v1 = vld [vmem:[#allocation2 + $0x58] sm:$0xff] }
  0xcd   : > { %2282 = vrcp.f32 %v1444_v54  ;;  %v1414_v62 = vld [vmem:[#allocation2 + $0x20] sm:$0xff]  ;;  %v1415_v5 = vld [vmem:[#allocation2 + $0x28] sm:$0xff]  ;;  %v934_v57 = vadd.f32 %v858_v51, %v742_v50 }
  0xce   : > { %2284 = vrcp.f32 %v1445_v59  ;;  %v1446_v3 = vadd.f32 1.0, %v1414_v62  ;;  %966 = vst.msk [vmem:[#allocation2 + $0x40] sm:$0xff] %vm700_vm1, %v933_v2  ;;  %v1447_v12 = vadd.f32 1.0, %v1415_v5  ;;  %v753_v54 = vld [vmem:[#allocation2 + $0xa0] sm:$0xff] }
  0xcf   : > { %v861_v9 = vpop.xlane.xlu0 %860  ;;  %967 = vst.msk [vmem:[#allocation2 + $0x48] sm:$0xff] %vm700_vm1, %v934_v57  ;;  %v761_v57 = vld [vmem:[#allocation2 + $0xe0] sm:$0xff] }
  0xd0   : > { %v935_v11 = vadd.f32 %v861_v9, %v743_v8  ;;  %2286 = vrcp.f32 %v1446_v3  ;;  %v864_v2 = vpop.xlane.xlu1 %863  ;;  %v755_v3 = vld [vmem:[#allocation2 + $0xb0] sm:$0xff] }
  0xd1   : > { %v1416_v13 = vld [vmem:[#allocation2 + $0x30] sm:$0xff]  ;;  %2288 = vrcp.f32 %v1447_v12  ;;  %v1417_v23 = vld [vmem:[#allocation2 + $0x38] sm:$0xff] }
  0xd2   : > { %968 = vst.msk [vmem:[#allocation2 + $0x50] sm:$0xff] %vm700_vm1, %v935_v11  ;;  %v1448_v21 = vadd.f32 1.0, %v1416_v13  ;;  %v1449_v28 = vadd.f32 1.0, %v1417_v23  ;;  %v936_v11 = vadd.f32 %v864_v2, %v744_v1  ;;  %v746_v23 = vld [vmem:[#allocation2 + $0x68] sm:$0xff] }
  0xd3   : > { %v867_v17 = vpop.xlane.xlu0 %866 }
  0xd4   : > { %v937_v20 = vadd.f32 %v867_v17, %v745_v16  ;;  %2290 = vrcp.f32 %v1448_v21  ;;  %v1410_v17 = vld [vmem:[#allocation2] sm:$0xff]  ;;  %969 = vst.msk [vmem:[#allocation2 + $0x58] sm:$0xff] %vm700_vm1, %v936_v11 }
  0xd5   : > { %v1418_v30 = vld [vmem:[#allocation2 + $0x40] sm:$0xff]  ;;  %2292 = vrcp.f32 %v1449_v28  ;;  %v1442_v21 = vadd.f32 1.0, %v1410_v17 }
  0xd6   : > { %970 = vst.msk [vmem:[#allocation2 + $0x60] sm:$0xff] %vm700_vm1, %v937_v20  ;;  %v1450_v36 = vadd.f32 1.0, %v1418_v30 }
  0xd7   : > { %v873_v25 = vpop.xlane.xlu0 %872 }
  0xd8   : > { %v939_v26 = vadd.f32 %v873_v25, %v747_v24  ;;  %2294 = vrcp.f32 %v1450_v36  ;;  %v870_v24 = vpop.xlane.xlu1 %869  ;;  %v757_v25 = vld [vmem:[#allocation2 + $0xc0] sm:$0xff] }
  0xd9   : > { %v2281_v15 = vpop.eup %2280  ;;  %v1420_v38 = vld [vmem:[#allocation2 + $0x50] sm:$0xff]  ;;  %v938_v30 = vadd.f32 %v870_v24, %v746_v23 }
  0xda   : > { %1545 = vperm.xlu1 %2261, %v2281_v15   ;;  %v2283_v22 = vpop.eup %2282  ;;  %972 = vst.msk [vmem:[#allocation2 + $0x70] sm:$0xff] %vm700_vm1, %v939_v26  ;;  %v1452_v7 = vadd.f32 1.0, %v1420_v38  ;;  %v748_v38 = vld [vmem:[#allocation2 + $0x78] sm:$0xff] }
  0xdb   : > { %v2285_v29 = vpop.eup %2284  ;;  %v879_v32 = vpop.xlane.xlu0 %878  ;;  %971 = vst.msk [vmem:[#allocation2 + $0x68] sm:$0xff] %vm700_vm1, %v938_v30  ;;  %v1421_v50 = vld [vmem:[#allocation2 + $0x58] sm:$0xff] }
  0xdc   : > { %v941_v34 = vadd.f32 %v879_v32, %v749_v31  ;;  %2296 = vrcp.f32 %v1452_v7 }
  0xdd   : > { %v2287_v37 = vpop.eup %2286  ;;  %v1422_v47 = vld [vmem:[#allocation2 + $0x60] sm:$0xff] }
  0xde   : > { %1550 = vperm.xlu1 %2261, %v2283_v22   ;;  %974 = vst.msk [vmem:[#allocation2 + $0x80] sm:$0xff] %vm700_vm1, %v941_v34  ;;  %v2289_v45 = vpop.eup %2288  ;;  %v1454_v59 = vadd.f32 1.0, %v1422_v47  ;;  %v1419_v34 = vld [vmem:[#allocation2 + $0x48] sm:$0xff] }
  0xdf   : > { %v885_v41 = vpop.xlane.xlu0 %884 }
  0xe0   : > { %v943_v6 = vadd.f32 %v885_v41, %v751_v40  ;;  %2298 = vrcp.f32 %v1454_v59  ;;  %v759_v40 = vld [vmem:[#allocation2 + $0xd0] sm:$0xff] }
  0xe1   : > { %v1424_v61 = vld [vmem:[#allocation2 + $0x70] sm:$0xff]  ;;  %v2291_v62 = vpop.eup %2290 }
  0xe2   : > { %1555 = vperm.xlu1 %2261, %v2285_v29   ;;  %976 = vst.msk [vmem:[#allocation2 + $0x90] sm:$0xff] %vm700_vm1, %v943_v6  ;;  %v1456_v8 = vadd.f32 1.0, %v1424_v61  ;;  %v2293_v15 = vpop.eup %2292 }
  0xe3   : > { %v891_v55 = vpop.xlane.xlu0 %890 }
  0xe4   : > { %v945_v58 = vadd.f32 %v891_v55, %v753_v54  ;;  %2300 = vrcp.f32 %v1456_v8  ;;  %v1453_v54 = vadd.f32 1.0, %v1421_v50  ;;  %v750_v55 = vld [vmem:[#allocation2 + $0x88] sm:$0xff] }
  0xe5   : > { %v1426_v13 = vld [vmem:[#allocation2 + $0x80] sm:$0xff]  ;;  %2302 = vrcp.f32 %v1442_v21 }
  0xe6   : > { %1560 = vperm.xlu1 %2261, %v2287_v37   ;;  %978 = vst.msk [vmem:[#allocation2 + $0xa0] sm:$0xff] %vm700_vm1, %v945_v58  ;;  %v1458_v28 = vadd.f32 1.0, %v1426_v13  ;;  %v1451_v37 = vadd.f32 1.0, %v1419_v34 }
  0xe7   : > { %v897_v5 = vpop.xlane.xlu0 %896 }
  0xe8   : > { %v947_v12 = vadd.f32 %v897_v5, %v755_v3  ;;  %2304 = vrcp.f32 %v1458_v28  ;;  %v1423_v3 = vld [vmem:[#allocation2 + $0x68] sm:$0xff] }
  0xe9   : > { %v1428_v32 = vld [vmem:[#allocation2 + $0x90] sm:$0xff]  ;;  %2306 = vrcp.f32 %v1451_v37  ;;  %v1455_v8 = vadd.f32 1.0, %v1423_v3 }
  0xea   : > { %1565 = vperm.xlu1 %2261, %v2289_v45   ;;  %980 = vst.msk [vmem:[#allocation2 + $0xb0] sm:$0xff] %vm700_vm1, %v947_v12  ;;  %v763_v12 = vld [vmem:[#allocation2 + $0xf0] sm:$0xff] }
  0xeb   : > { %v903_v26 = vpop.xlane.xlu0 %902 }
  0xec   : > { %v949_v31 = vadd.f32 %v903_v26, %v757_v25 }
  0xed   : > { %v1430_v47 = vld [vmem:[#allocation2 + $0xa0] sm:$0xff] }
  0xee   : > { %1570 = vperm.xlu1 %2261, %v2291_v62   ;;  %982 = vst.msk [vmem:[#allocation2 + $0xc0] sm:$0xff] %vm700_vm1, %v949_v31  ;;  %v1462_v59 = vadd.f32 1.0, %v1430_v47  ;;  %v754_v31 = vld [vmem:[#allocation2 + $0xa8] sm:$0xff] }
  0xef   : > { %v909_v41 = vpop.xlane.xlu0 %908 }
  0xf0   : > { %v951_v45 = vadd.f32 %v909_v41, %v759_v40 }
  0xf1   : > { %v1432_v1 = vld [vmem:[#allocation2 + $0xb0] sm:$0xff] }
  0xf2   : > { %1575 = vperm.xlu1 %2261, %v2293_v15   ;;  %984 = vst.msk [vmem:[#allocation2 + $0xd0] sm:$0xff] %vm700_vm1, %v951_v45  ;;  %v1464_v15 = vadd.f32 1.0, %v1432_v1  ;;  %v756_v45 = vld [vmem:[#allocation2 + $0xb8] sm:$0xff] }
  0xf3   : > { %v915_v58 = vpop.xlane.xlu0 %914 }
  0xf4   : > { %v2146_v33 = vpop.f32.mrf.mxu0 }
  0xf5   : > { %v1434_v24 = vld [vmem:[#allocation2 + $0xc0] sm:$0xff] }
  0xf6   : > { %v489_v39 = vpop.f32.mrf.mxu0 }
  0xf7   : > { %v921_v13 = vpop.xlane.xlu0 %920 }
  0xf8   : > { %v2147_v42 = vpop.f32.mrf.mxu0  ;;  %v955_v23 = vadd.f32 %v921_v13, %v763_v12 }
  0xf9   : > { %v2790_v46 = vpack.c.bf16 %v2147_v42, %v2146_v33  ;;  %v2295_v33 = vpop.eup %2294  ;;  %v1460_v42 = vadd.f32 1.0, %v1428_v32 }
  0xfa   : > { %v492_v48 = vpop.f32.mrf.mxu0  ;;  %1580 = vperm.xlu1 %2261, %v2295_v33   ;;  %988 = vst.msk [vmem:[#allocation2 + $0xf0] sm:$0xff] %vm700_vm1, %v955_v23  ;;  %v1466_v33 = vadd.f32 1.0, %v1434_v24 }
  0xfb   : > { %v2793_v49 = vpack.c.bf16 %v492_v48, %v489_v39  ;;  %v876_v39 = vpop.xlane.xlu1 %875  ;;  %v2297_v48 = vpop.eup %2296  ;;  %2308 = vrcp.f32 %v1460_v42 }
  0xfc   : > { %v2150_v56 = vpop.f32.mrf.mxu0  ;;  %v940_v7 = vadd.f32 %v876_v39, %v748_v38  ;;  %2310 = vrcp.f32 %v1453_v54  ;;  %v2299_v2 = vpop.eup %2298  ;;  %v1436_v39 = vld [vmem:[#allocation2 + $0xd0] sm:$0xff] }
  0xfd   : > { %2312 = vrcp.f32 %v1462_v59  ;;  %v2301_v17 = vpop.eup %2300 }
  0xfe   : > { %v505_v63 = vpop.f32.mrf.mxu0  ;;  %973 = vst.msk [vmem:[#allocation2 + $0x78] sm:$0xff] %vm700_vm1, %v940_v7  ;;  %1590 = vperm.xlu1 %2261, %v2297_v48   ;;  %2314 = vrcp.f32 %v1455_v8  ;;  %v2303_v25 = vpop.eup %2302  ;;  %v1468_v48 = vadd.f32 1.0, %v1436_v39 }
  0xff   : > { %1540 = vperm.xlu0 %2260, %v2303_v25   ;;  %2316 = vrcp.f32 %v1464_v15  ;;  %v2305_v34 = vpop.eup %2304 }
 0x100   : > { %v2151_v9 = vpop.f32.mrf.mxu0  ;;  %v2307_v40 = vpop.eup %2306 }
 0x101   : > { %v2797_v16 = vpack.c.bf16 %v2151_v9, %v2150_v56  ;;  %v882_v56 = vpop.xlane.xlu1 %881  ;;  %v752_v9 = vld [vmem:[#allocation2 + $0x98] sm:$0xff]  ;;  %v1440_v23 = vld [vmem:[#allocation2 + $0xf0] sm:$0xff] }
 0x102   : > { %v508_v20 = vpop.f32.mrf.mxu0  ;;  %v942_v62 = vadd.f32 %v882_v56, %v750_v55  ;;  %1600 = vperm.xlu1 %2261, %v2299_v2  }
 0x103   : > { %v2801_v22 = vpack.c.bf16 %v508_v20, %v505_v63  ;;  %v953_v63 = vadd.f32 %v915_v58, %v761_v57  ;;  %1585 = vperm.xlu0 %2260, %v2307_v40  }
 0x104   : > { %v2803_v29 = vpop.f32.mrf.mxu0  ;;  %975 = vst.msk [vmem:[#allocation2 + $0x88] sm:$0xff] %vm700_vm1, %v942_v62 }
 0x105   : > { %986 = vst.msk [vmem:[#allocation2 + $0xe0] sm:$0xff] %vm700_vm1, %v953_v63  ;;  %v888_v11 = vpop.xlane.xlu1 %887  ;;  %v1425_v26 = vld [vmem:[#allocation2 + $0x78] sm:$0xff]  ;;  %v758_v63 = vld [vmem:[#allocation2 + $0xc8] sm:$0xff] }
 0x106   : > { %v2805_v36 = vpop.f32.mrf.mxu0  ;;  %v944_v21 = vadd.f32 %v888_v11, %v752_v9  ;;  %v1457_v30 = vadd.f32 1.0, %v1425_v26  ;;  %1610 = vperm.xlu1 %2261, %v2301_v17   ;;  %v760_v17 = vld [vmem:[#allocation2 + $0xd8] sm:$0xff] }
 0x108   : > { %v2809_v6 = vpop.f32.mrf.mxu0  ;;  %977 = vst.msk [vmem:[#allocation2 + $0x98] sm:$0xff] %vm700_vm1, %v944_v21  ;;  %2318 = vrcp.f32 %v1457_v30  ;;  %v2309_v50 = vpop.eup %2308 }
 0x109   : > { %v894_v32 = vpop.xlane.xlu1 %893  ;;  %2320 = vrcp.f32 %v1466_v33  ;;  %v2311_v57 = vpop.eup %2310  ;;  %v1472_v33 = vadd.f32 1.0, %v1440_v23 }
 0x10a   : > { %v2811_v51 = vpop.f32.mrf.mxu0  ;;  %v946_v38 = vadd.f32 %v894_v32, %v754_v31  ;;  %1620 = vperm.xlu1 %2261, %v2305_v34   ;;  %1595 = vperm.xlu0 %2260, %v2311_v57   ;;  %v2313_v3 = vpop.eup %2312 }
 0x10b   : > { %v1427_v41 = vld [vmem:[#allocation2 + $0x88] sm:$0xff]  ;;  %v2315_v11 = vpop.eup %2314 }
 0x10c   : > { %v2815_v61 = vpop.f32.mrf.mxu0  ;;  %979 = vst.msk [vmem:[#allocation2 + $0xa8] sm:$0xff] %vm700_vm1, %v946_v38  ;;  %v1459_v7 = vadd.f32 1.0, %v1427_v41  ;;  %v1438_v56 = vld [vmem:[#allocation2 + $0xe0] sm:$0xff]  ;;  %v2317_v24 = vpop.eup %2316  ;;  %v762_v38 = vld [vmem:[#allocation2 + $0xe8] sm:$0xff] }
 0x10d   : > { %v900_v47 = vpop.xlane.xlu1 %899  ;;  %v1470_v2 = vadd.f32 1.0, %v1438_v56 }
 0x10e   : > { %v2817_v5 = vpop.f32.mrf.mxu0  ;;  %v948_v55 = vadd.f32 %v900_v47, %v756_v45  ;;  %2322 = vrcp.f32 %v1459_v7  ;;  %1630 = vperm.xlu1 %2261, %v2309_v50   ;;  %1605 = vperm.xlu0 %2260, %v2315_v11   ;;  %v764_v47 = vld [vmem:[#allocation2 + $0xf8] sm:$0xff] }
 0x10f   : > { %v1429_v58 = vld [vmem:[#allocation2 + $0x98] sm:$0xff]  ;;  %2324 = vrcp.f32 %v1468_v48 }
 0x110   : > { %v2821_v20 = vpop.f32.mrf.mxu0  ;;  %981 = vst.msk [vmem:[#allocation2 + $0xb8] sm:$0xff] %vm700_vm1, %v948_v55  ;;  %v1461_v62 = vadd.f32 1.0, %v1429_v58 }
 0x111   : > { %v906_v1 = vpop.xlane.xlu1 %905 }
 0x112   : > { %v2823_v28 = vpop.f32.mrf.mxu0  ;;  %v950_v9 = vadd.f32 %v906_v1, %v758_v63  ;;  %2326 = vrcp.f32 %v1461_v62  ;;  %1640 = vperm.xlu1 %2261, %v2313_v3  }
 0x113   : > { %v1431_v12 = vld [vmem:[#allocation2 + $0xa8] sm:$0xff]  ;;  %2328 = vrcp.f32 %v1470_v2 }
 0x114   : > { %v2827_v37 = vpop.f32.mrf.mxu0  ;;  %983 = vst.msk [vmem:[#allocation2 + $0xc8] sm:$0xff] %vm700_vm1, %v950_v9  ;;  %v1463_v15 = vadd.f32 1.0, %v1431_v12 }
 0x115   : > { %v912_v21 = vpop.xlane.xlu1 %911  ;;  %v2319_v30 = vpop.eup %2318 }
 0x116   : > { %v2829_v42 = vpop.f32.mrf.mxu0  ;;  %v952_v26 = vadd.f32 %v912_v21, %v760_v17  ;;  %2330 = vrcp.f32 %v1463_v15  ;;  %1615 = vperm.xlu0 %2260, %v2319_v30   ;;  %v2321_v40 = vpop.eup %2320  ;;  %1650 = vperm.xlu1 %2261, %v2317_v24  }
 0x117   : > { %v1433_v31 = vld [vmem:[#allocation2 + $0xb8] sm:$0xff] }
 0x118   : > { %v2832_v54 = vpop.f32.mrf.mxu0  ;;  %985 = vst.msk [vmem:[#allocation2 + $0xd8] sm:$0xff] %vm700_vm1, %v952_v26  ;;  %v1465_v34 = vadd.f32 1.0, %v1433_v31  ;;  %v623_v31 = vpack.c.bf16 %v2821_v20, %v2815_v61  ;;  %v621_v20 = vpack.c.bf16 %v2809_v6, %v2803_v29 }
 0x119   : > { %v918_v39 = vpop.xlane.xlu1 %917 }
 0x11a   : > { %v2834_v59 = vpop.f32.mrf.mxu0  ;;  %v954_v7 = vadd.f32 %v918_v39, %v762_v38  ;;  %2332 = vrcp.f32 %v1465_v34  ;;  %1660 = vperm.xlu1 %2261, %v2321_v40  }
 0x11b   : > { %v2323_v45 = vpop.eup %2322  ;;  %v1435_v48 = vld [vmem:[#allocation2 + $0xc8] sm:$0xff]  ;;  %2334 = vrcp.f32 %v1472_v33  ;;  %v624_v6 = vpack.c.bf16 %v2834_v59, %v2829_v42  ;;  %v2347_v42 = vld [vmem:[%s2597_s9 + $0x10] sm:$0xff]  ;;  %v2348_v59 = vld [vmem:[%s2597_s9 + $0x18] sm:$0xff] }
 0x11c   : > { %v2837_v8 = vpop.f32.mrf.mxu0  ;;  %987 = vst.msk [vmem:[#allocation2 + $0xe8] sm:$0xff] %vm700_vm1, %v954_v7  ;;  %1625 = vperm.xlu0 %2260, %v2323_v45   ;;  %v1467_v55 = vadd.f32 1.0, %v1435_v48  ;;  %v2325_v57 = vpop.eup %2324  ;;  %v622_v7 = vpack.c.bf16 %v2823_v28, %v2817_v5  ;;  %v620_v5 = vpack.c.bf16 %v2811_v51, %v2805_v36  ;;  %v625_v36 = vpack.c.bf16 %v2832_v54, %v2827_v37  ;;  %v2345_v51 = vld [vmem:[%s2597_s9 + $0x8] sm:$0xff]  ;;  %v2346_v54 = vld [vmem:[%s2597_s9 + $0x50] sm:$0xff] }
 0x11d   : > { %v924_v56 = vpop.xlane.xlu1 %923 }
 0x11e   : > { %v2839_v13 = vpop.f32.mrf.mxu0  ;;  %v956_v62 = vadd.f32 %v924_v56, %v764_v47  ;;  %2336 = vrcp.f32 %v1467_v55  ;;  %1670 = vperm.xlu1 %2261, %v2325_v57  }
 0x11f   : > { %v2327_v63 = vpop.eup %2326  ;;  %v1437_v1 = vld [vmem:[#allocation2 + $0xd8] sm:$0xff] }
 0x120   : > { %v2842_v25 = vpop.f32.mrf.mxu0  ;;  %989 = vst.msk [vmem:[#allocation2 + $0xf8] sm:$0xff] %vm700_vm1, %v956_v62  ;;  %1635 = vperm.xlu0 %2260, %v2327_v63   ;;  %v1469_v3 = vadd.f32 1.0, %v1437_v1  ;;  %v2329_v9 = vpop.eup %2328  ;;  %v2353_v62 = vld [vmem:[%s2597_s9 + $0x30] sm:$0xff]  ;;  %v2354_v63 = vld [vmem:[%s2597_s9 + $0x38] sm:$0xff] }
 0x121   : > { %v627_v28 = vpack.c.bf16 %v2842_v25, %v2837_v8  ;;  %v1975_v8 = vcombine.high %v2347_v42, %v2348_v59  ;;  %v1974_v25 = vcombine.low %v2347_v42, %v2348_v59  ;;  %v1979_v1 = vcombine.high %v2353_v62, %v2354_v63  ;;  %v2932_v42 = vld [vmem:[%s3066_s3] ss:$0 sm:$0xff] }
 0x122   : > { %v2844_v32 = vpop.f32.mrf.mxu0  ;;  %2338 = vrcp.f32 %v1469_v3  ;;  %1680 = vperm.xlu1 %2261, %v2329_v9   ;;  %v1978_v3 = vcombine.low %v2353_v62, %v2354_v63 }
 0x123   : > { %v2331_v12 = vpop.eup %2330  ;;  %v1439_v15 = vld [vmem:[#allocation2 + $0xe8] sm:$0xff]  ;;  %v626_v29 = vpack.c.bf16 %v2844_v32, %v2839_v13  ;;  %v2349_v13 = vld [vmem:[%s2597_s9 + $0x60] sm:$0xff] }
 0x124   : > { %v2170_v41 = vpop.f32.mrf.mxu0  ;;  %1645 = vperm.xlu0 %2260, %v2331_v12   ;;  %v1471_v21 = vadd.f32 1.0, %v1439_v15  ;;  %v2350_v32 = vld [vmem:[%s2597_s9 + $0x20] sm:$0xff]  ;;  %v2357_v12 = vld [vmem:[%s2597_s9 + $0x48] sm:$0xff] }
 0x126   : > { %v585_v50 = vpop.f32.mrf.mxu0  ;;  %2340 = vrcp.f32 %v1471_v21 }
 0x127   : > { %v2333_v24 = vpop.eup %2332  ;;  %v1441_v30 = vld [vmem:[#allocation2 + $0xf8] sm:$0xff] }
 0x128   : > { %v2171_v58 = vpop.f32.mrf.mxu0  ;;  %1655 = vperm.xlu0 %2260, %v2333_v24   ;;  %v1473_v34 = vadd.f32 1.0, %v1441_v30  ;;  %v2335_v38 = vpop.eup %2334  ;;  %v2359_v24 = vld [vmem:[%s2597_s9 + $0xa0] sm:$0xff]  ;;  %v2360_v30 = vld [vmem:[%s2597_s9 + $0xb0] sm:$0xff] }
 0x129   : > { %1690 = vperm.xlu1 %2261, %v2335_v38   ;;  %v629_v45 = vpack.c.bf16 %v2171_v58, %v2170_v41 }
 0x12a   : > { %v588_v2 = vpop.f32.mrf.mxu0  ;;  %2342 = vrcp.f32 %v1473_v34  ;;  %v2361_v34 = vld [vmem:[%s2597_s9 + $0xc0] sm:$0xff] }
 0x12b   : > { %v2337_v40 = vpop.eup %2336  ;;  %v628_v47 = vpack.c.bf16 %v588_v2, %v585_v50  ;;  %v2351_v50 = vld [vmem:[%s2597_s9 + $0x28] sm:$0xff]  ;;  %v1996_v38 = vcombine.low %v2361_v34, %v2722_v4 }
 0x12c   : > { %v2174_v11 = vpop.f32.mrf.mxu0  ;;  %1665 = vperm.xlu0 %2260, %v2337_v40   ;;  %v1977_v55 = vcombine.high %v2350_v32, %v2351_v50  ;;  %v1976_v57 = vcombine.low %v2350_v32, %v2351_v50 }
 0x12e   : > { %v601_v17 = vpop.f32.mrf.mxu0 }
 0x12f   : > { %v2339_v61 = vpop.eup %2338 }
 0x130   : > { %v2175_v23 = vpop.f32.mrf.mxu0  ;;  %1675 = vperm.xlu0 %2260, %v2339_v61   ;;  %v2003_v61 = vcombine.high %v2705_v53, %v2737_v18 }
 0x131   : > { %v631_v26 = vpack.c.bf16 %v2175_v23, %v2174_v11  ;;  %v2356_v11 = vld [vmem:[%s2597_s9 + $0x40] sm:$0xff] }
 0x132   : > { %v604_v33 = vpop.f32.mrf.mxu0  ;;  %v1981_v15 = vcombine.high %v2356_v11, %v2357_v12  ;;  %v1980_v21 = vcombine.low %v2356_v11, %v2357_v12 }
 0x133   : > { %v630_v39 = vpack.c.bf16 %v604_v33, %v601_v17  ;;  %2030 = vmatprep.subr.bf16.mxu0 %v631_v26  ;;  %2176 = vmatprep.subr.bf16.mxu1 %v631_v26  ;;  %v2341_v48 = vpop.eup %2340  ;;  %v2358_v17 = vld [vmem:[%s2597_s9 + $0x90] sm:$0xff]  ;;  %v1993_v26 = vcombine.high %v2359_v24, %v2712_v60  ;;  %v1994_v33 = vcombine.low %v2360_v30, %v2717_v0 }
 0x134   : > { %2031 = vmatpush3.bf16.msra.mxu0 %v623_v31  ;;  %2184 = vmatpush3.bf16.msra.mxu1 %v623_v31  ;;  %v1990_v23 = vcombine.low %v2358_v17, %v2702_v52  ;;  %v1995_v31 = vcombine.high %v2360_v30, %v2717_v0  ;;  %v2363_v0 = vld [vmem:[%s2597_s9 + $0xe0] sm:$0xff] }
 0x135   : > { %2032 = vmatprep.subr.bf16.mxu0 %v630_v39  ;;  %2177 = vmatprep.subr.bf16.mxu1 %v630_v39  ;;  %v2362_v39 = vld [vmem:[%s2597_s9 + $0xd0] sm:$0xff] }
 0x136   : > { %1685 = vperm.xlu0 %2260, %v2341_v48   ;;  %v1999_v40 = vcombine.high %v2362_v39, %v2727_v10 }
 0x137   : > { %v2343_v41 = vpop.eup %2342 }
 0x138   : > { %2033 = vmatpush3.bf16.msra.mxu0 %v622_v7  ;;  %2185 = vmatpush3.bf16.msra.mxu1 %v622_v7  ;;  %v2001_v7 = vcombine.high %v2695_v44, %v2732_v14 }
 0x139   : > { %2034 = vmatprep.subr.bf16.mxu0 %v629_v45  ;;  %2178 = vmatprep.subr.bf16.mxu1 %v629_v45  ;;  %v2000_v45 = vcombine.low %v2363_v0, %v2732_v14 }
 0x13a   : > { %1695 = vperm.xlu0 %2260, %v2343_v41  }
 0x13c   : > { %2035 = vmatpush3.bf16.msra.mxu0 %v621_v20  ;;  %2186 = vmatpush3.bf16.msra.mxu1 %v621_v20 }
 0x13d   : > { %2036 = vmatprep.subr.bf16.mxu0 %v628_v47  ;;  %2179 = vmatprep.subr.bf16.mxu1 %v628_v47 }
 0x140   : > { %2037 = vmatpush3.bf16.msra.mxu0 %v620_v5  ;;  %2187 = vmatpush3.bf16.msra.mxu1 %v620_v5 }
 0x141   : > { %2038 = vmatprep.subr.bf16.mxu0 %v627_v28  ;;  %2180 = vmatprep.subr.bf16.mxu1 %v627_v28 }
 0x144   : > { %2039 = vmatpush3.bf16.msra.mxu0 %v2797_v16  ;;  %2188 = vmatpush3.bf16.msra.mxu1 %v2797_v16  ;;  %v2344_v16 = vld [vmem:[%s2597_s9] sm:$0xff] }
 0x145   : > { %2040 = vmatprep.subr.bf16.mxu0 %v626_v29  ;;  %2181 = vmatprep.subr.bf16.mxu1 %v626_v29  ;;  %v1972_v37 = vcombine.low %v2344_v16, %v2345_v51 }
 0x148   : > { %2041 = vmatpush3.bf16.msra.mxu0 %v2801_v22  ;;  %2189 = vmatpush3.bf16.msra.mxu1 %v2801_v22  ;;  %v1982_v22 = vcombine.low %v2346_v54, %v2674_v19  ;;  %v1984_v19 = vcombine.low %v2349_v13, %v2680_v27 }
 0x149   : > { %2042 = vmatprep.subr.bf16.mxu0 %v625_v36  ;;  %2182 = vmatprep.subr.bf16.mxu1 %v625_v36 }
 0x14c   : > { %2043 = vmatpush3.bf16.msra.mxu0 %v2790_v46  ;;  %2190 = vmatpush3.bf16.msra.mxu1 %v2790_v46  ;;  %v1985_v46 = vcombine.high %v2349_v13, %v2680_v27  ;;  %v2355_v27 = vld [vmem:[%s2597_s9 + $0x80] sm:$0xff] }
 0x14d   : > { %2044 = vmatprep.subr.bf16.mxu0 %v624_v6  ;;  %2183 = vmatprep.subr.bf16.mxu1 %v624_v6  ;;  %v1989_v2 = vcombine.high %v2355_v27, %v2692_v43  ;;  %v1988_v9 = vcombine.low %v2355_v27, %v2692_v43  ;;  %v1992_v43 = vcombine.low %v2359_v24, %v2712_v60 }
 0x14e   : > { %v1998_v60 = vcombine.low %v2362_v39, %v2727_v10 }
 0x150   : > { %2045 = vmatpush3.bf16.msra.mxu0 %v2793_v49  ;;  %2191 = vmatpush3.bf16.msra.mxu1 %v2793_v49  ;;  %v2352_v49 = vld [vmem:[%s2597_s9 + $0x70] sm:$0xff]  ;;  %s3011_s9 = scalar_lea.hbm %s3067_s4, %s2012_s25 }
 0x151   : > { %v1987_v56 = vcombine.high %v2352_v49, %v2686_v35  ;;  %v1986_v58 = vcombine.low %v2352_v49, %v2686_v35  ;;  %v1991_v35 = vcombine.high %v2358_v17, %v2702_v52  ;;  %v1997_v52 = vcombine.high %v2361_v34, %v2722_v4 }
 0x152   : > { %v2002_v4 = vcombine.low %v2705_v53, %v2737_v18 }
 0x153   : > { %1215 = vmatmul.mubr.bf16.vlgmr.msra.gmra.mxu0 %v1972_v37  ;;  %1255 = vmatmul.mubr.bf16.vlgmr.msra.gmra.mxu1 %v1982_v22 }
 0x154   : > { %1222 = vmatprep.mubr.bf16.mxu0 %v1975_v8  ;;  %1262 = vmatprep.mubr.bf16.mxu1 %v1985_v46 }
 0x155   : > { %v1546_v20 = vpop.permute.xlu1 %1545 }
 0x159   : > { %v1551_v47 = vpop.permute.xlu1 %1550 }
 0x15b   : > { %1223 = vmatmul.mubr.bf16.gmra.mxu0 %v1974_v25  ;;  %1263 = vmatmul.mubr.bf16.gmra.mxu1 %v1984_v19 }
 0x15c   : > { %1230 = vmatprep.mubr.bf16.mxu0 %v1977_v55  ;;  %1270 = vmatprep.mubr.bf16.mxu1 %v1987_v56 }
 0x15d   : > { %v1556_v10 = vpop.permute.xlu1 %1555 }
 0x161   : > { %v2917_v48 = vpop.permute.xlu1 %1560 }
 0x163   : > { %1231 = vmatmul.mubr.bf16.gmra.mxu0 %v1976_v57  ;;  %1271 = vmatmul.mubr.bf16.gmra.mxu1 %v1986_v58 }
 0x164   : > { %1238 = vmatprep.mubr.bf16.mxu0 %v1979_v1  ;;  %1278 = vmatprep.mubr.bf16.mxu1 %v1989_v2 }
 0x165   : > { %v2919_v44 = vpop.permute.xlu1 %1565 }
 0x169   : > { %v2921_v5 = vpop.permute.xlu1 %1570 }
 0x16b   : > { %1239 = vmatmul.mubr.bf16.gmra.mxu0 %v1978_v3  ;;  %1279 = vmatmul.mubr.bf16.gmra.mxu1 %v1988_v9 }
 0x16c   : > { %1246 = vmatprep.mubr.bf16.mxu0 %v1981_v15  ;;  %1286 = vmatprep.mubr.bf16.mxu1 %v1991_v35 }
 0x16d   : > { %v2923_v28 = vpop.permute.xlu1 %1575 }
 0x173   : > { %1247 = vmatmul.mubr.bf16.gmra.mxu0 %v1980_v21  ;;  %1287 = vmatmul.mubr.bf16.gmra.mxu1 %v1990_v23 }
 0x174   : > { %1294 = vmatprep.mubr.bf16.mxu1 %v1993_v26 }
 0x175   : > { %v2925_v41 = vpop.permute.xlu1 %1580 }
 0x179   : > { %v1591_v22 = vpop.permute.xlu1 %1590 }
 0x17a   : > { %v1541_v14 = vpop.permute.xlu0 %1540 }
 0x17b   : > { %1295 = vmatmul.mubr.bf16.gmra.mxu1 %v1992_v43 }
 0x17c   : > { %1302 = vmatprep.mubr.bf16.mxu1 %v1995_v31 }
 0x17d   : > { %v1601_v9 = vpop.permute.xlu1 %1600 }
 0x17e   : > { %v2927_v51 = vpop.permute.xlu0 %1585 }
 0x183   : > { %1303 = vmatmul.mubr.bf16.gmra.mxu1 %v1994_v33 }
 0x184   : > { %1310 = vmatprep.mubr.bf16.mxu1 %v1997_v52 }
 0x185   : > { %v1596_v56 = vpop.permute.xlu0 %1595 }
 0x189   : > { %v1606_v33 = vpop.permute.xlu0 %1605 }
 0x18b   : > { %1311 = vmatmul.mubr.bf16.gmra.mxu1 %v1996_v38 }
 0x18c   : > { %1318 = vmatprep.mubr.bf16.mxu1 %v1999_v40 }
 0x193   : > { %1319 = vmatmul.mubr.bf16.gmra.mxu1 %v1998_v60 }
 0x194   : > { %1326 = vmatprep.mubr.bf16.mxu1 %v2001_v7 }
 0x19b   : > { %1327 = vmatmul.mubr.bf16.gmra.mxu1 %v2000_v45  ;;  %v1611_v45 = vpop.permute.xlu1 %1610 }
 0x19c   : > { %1334 = vmatprep.mubr.bf16.mxu1 %v2003_v61 }
 0x1a3   : > { %1335 = vmatmul.mubr.bf16.gmra.mxu1 %v2002_v4 }
 0x213   : > { %v2046_v29 = vpop.f32.mrf.mxu0  ;;  %v2076_v36 = vpop.f32.mrf.mxu1 }
 0x215   : > { %v2047_v6 = vpop.f32.mrf.mxu0  ;;  %v2077_v16 = vpop.f32.mrf.mxu1 }
 0x216   : > { %v2048_v53 = vadd.f32 %v2047_v6, %v2046_v29  ;;  %v2078_v18 = vadd.f32 %v2077_v16, %v2076_v36 }
 0x217   : > { %v2049_v37 = vpop.f32.mrf.mxu0  ;;  %v2079_v54 = vpop.f32.mrf.mxu1 }
 0x218   : > { %v1698_v13 = vmul.f32 %v2048_v53, %v1541_v14  ;;  %v1708_v46 = vmul.f32 %v2078_v18, %v1591_v22  ;;  %v1616_v53 = vpop.permute.xlu0 %1615 }
 0x219   : > { %v2050_v59 = vpop.f32.mrf.mxu0  ;;  %v2080_v8 = vpop.f32.mrf.mxu1 }
 0x21a   : > { %v2051_v25 = vadd.f32 %v2050_v59, %v2049_v37  ;;  %v2081_v19 = vadd.f32 %v2080_v8, %v2079_v54  ;;  %v1737_v55 = vadd.f32 %v2932_v42, %v1698_v13  ;;  %v1747_v49 = vadd.f32 %v2932_v42, %v1708_v46 }
 0x21b   : > { %v2052_v32 = vpop.f32.mrf.mxu0  ;;  %v2082_v50 = vpop.f32.mrf.mxu1 }
 0x21c   : > { %1769 = vst [vmem:[%s2938_s26] sm:$0xff] %v1737_v55  ;;  %1779 = vst [vmem:[%s2938_s26 + $0x50] sm:$0xff] %v1747_v49  ;;  %v1699_v62 = vmul.f32 %v2051_v25, %v1546_v20  ;;  %v1709_v63 = vmul.f32 %v2081_v19, %v1596_v56  ;;  %v1621_v19 = vpop.permute.xlu1 %1620 }
 0x21d   : > { %v2053_v57 = vpop.f32.mrf.mxu0  ;;  %v2083_v58 = vpop.f32.mrf.mxu1 }
 0x21e   : > { %v2054_v1 = vadd.f32 %v2053_v57, %v2052_v32  ;;  %v2084_v27 = vadd.f32 %v2083_v58, %v2082_v50  ;;  %v1738_v11 = vadd.f32 %v2932_v42, %v1699_v62  ;;  %v1748_v12 = vadd.f32 %v2932_v42, %v1709_v63 }
 0x21f   : > { %v2055_v2 = vpop.f32.mrf.mxu0  ;;  %v2085_v3 = vpop.f32.mrf.mxu1 }
 0x220   : > { %1770 = vst [vmem:[%s2938_s26 + $0x8] sm:$0xff] %v1738_v11  ;;  %1780 = vst [vmem:[%s2938_s26 + $0x58] sm:$0xff] %v1748_v12  ;;  %v1700_v35 = vmul.f32 %v2054_v1, %v1551_v47  ;;  %v1710_v21 = vmul.f32 %v2084_v27, %v1601_v9  ;;  %v1626_v1 = vpop.permute.xlu0 %1625 }
 0x221   : > { %v2056_v15 = vpop.f32.mrf.mxu0  ;;  %v2086_v17 = vpop.f32.mrf.mxu1 }
 0x222   : > { %v2057_v23 = vadd.f32 %v2056_v15, %v2055_v2  ;;  %v2087_v24 = vadd.f32 %v2086_v17, %v2085_v3  ;;  %v1739_v30 = vadd.f32 %v2932_v42, %v1700_v35  ;;  %v1749_v31 = vadd.f32 %v2932_v42, %v1710_v21  ;;  %v1631_v21 = vpop.permute.xlu1 %1630 }
 0x223   : > { %v2058_v26 = vpop.f32.mrf.mxu0  ;;  %v2088_v43 = vpop.f32.mrf.mxu1 }
 0x224   : > { %1771 = vst [vmem:[%s2938_s26 + $0x10] sm:$0xff] %v1739_v30  ;;  %1781 = vst [vmem:[%s2938_s26 + $0x60] sm:$0xff] %v1749_v31  ;;  %v1701_v38 = vmul.f32 %v2057_v23, %v1556_v10  ;;  %v1711_v39 = vmul.f32 %v2087_v24, %v1606_v33 }
 0x225   : > { %v2059_v34 = vpop.f32.mrf.mxu0  ;;  %v2089_v52 = vpop.f32.mrf.mxu1 }
 0x226   : > { %v2060_v40 = vadd.f32 %v2059_v34, %v2058_v26  ;;  %v2090_v60 = vadd.f32 %v2089_v52, %v2088_v43  ;;  %v1740_v61 = vadd.f32 %v2932_v42, %v1701_v38  ;;  %v1750_v4 = vadd.f32 %v2932_v42, %v1711_v39  ;;  %v1636_v39 = vpop.permute.xlu0 %1635 }
 0x227   : > { %v2061_v7 = vpop.f32.mrf.mxu0  ;;  %v2091_v0 = vpop.f32.mrf.mxu1 }
 0x228   : > { %1772 = vst [vmem:[%s2938_s26 + $0x18] sm:$0xff] %v1740_v61  ;;  %1782 = vst [vmem:[%s2938_s26 + $0x68] sm:$0xff] %v1750_v4  ;;  %v1702_v14 = vmul.f32 %v2060_v40, %v2917_v48  ;;  %v1712_v29 = vmul.f32 %v2090_v60, %v1611_v45  ;;  %v1641_v4 = vpop.permute.xlu1 %1640 }
 0x229   : > { %v2062_v20 = vpop.f32.mrf.mxu0  ;;  %v2092_v47 = vpop.f32.mrf.mxu1 }
 0x22a   : > { %v2063_v10 = vadd.f32 %v2062_v20, %v2061_v7  ;;  %v2093_v36 = vadd.f32 %v2092_v47, %v2091_v0  ;;  %v1741_v18 = vadd.f32 %v2932_v42, %v1702_v14  ;;  %v1751_v37 = vadd.f32 %v2932_v42, %v1712_v29 }
 0x22b   : > { %v2064_v6 = vpop.f32.mrf.mxu0  ;;  %v2094_v16 = vpop.f32.mrf.mxu1 }
 0x22c   : > { %1773 = vst [vmem:[%s2938_s26 + $0x20] sm:$0xff] %v1741_v18  ;;  %1783 = vst [vmem:[%s2938_s26 + $0x70] sm:$0xff] %v1751_v37  ;;  %v1703_v59 = vmul.f32 %v2063_v10, %v2919_v44  ;;  %v1713_v8 = vmul.f32 %v2093_v36, %v1616_v53  ;;  %v1646_v36 = vpop.permute.xlu0 %1645  ;;  %v1651_v37 = vpop.permute.xlu1 %1650 }
 0x22d   : > { %v2065_v54 = vpop.f32.mrf.mxu0  ;;  %v2095_v22 = vpop.f32.mrf.mxu1 }
 0x22e   : > { %v2066_v48 = vadd.f32 %v2065_v54, %v2064_v6  ;;  %v2096_v13 = vadd.f32 %v2095_v22, %v2094_v16  ;;  %v1742_v32 = vadd.f32 %v2932_v42, %v1703_v59  ;;  %v1752_v50 = vadd.f32 %v2932_v42, %v1713_v8 }
 0x22f   : > { %v2067_v46 = vpop.f32.mrf.mxu0  ;;  %v2097_v25 = vpop.f32.mrf.mxu1 }
 0x230   : > { %1774 = vst [vmem:[%s2938_s26 + $0x28] sm:$0xff] %v1742_v32  ;;  %1784 = vst [vmem:[%s2938_s26 + $0x78] sm:$0xff] %v1752_v50  ;;  %v1704_v56 = vmul.f32 %v2066_v48, %v2921_v5  ;;  %v1714_v57 = vmul.f32 %v2096_v13, %v1621_v19  ;;  %v1656_v13 = vpop.permute.xlu0 %1655 }
 0x231   : > { %v2068_v55 = vpop.f32.mrf.mxu0  ;;  %v2098_v49 = vpop.f32.mrf.mxu1 }
 0x232   : > { %v2069_v44 = vadd.f32 %v2068_v55, %v2067_v46  ;;  %v2099_v58 = vadd.f32 %v2098_v49, %v2097_v25  ;;  %v1743_v27 = vadd.f32 %v2932_v42, %v1704_v56  ;;  %v1753_v2 = vadd.f32 %v2932_v42, %v1714_v57  ;;  %v1661_v55 = vpop.permute.xlu1 %1660 }
 0x233   : > { %v2070_v62 = vpop.f32.mrf.mxu0  ;;  %v2100_v63 = vpop.f32.mrf.mxu1 }
 0x234   : > { %1775 = vst [vmem:[%s2938_s26 + $0x30] sm:$0xff] %v1743_v27  ;;  %1785 = vst [vmem:[%s2938_s26 + $0x80] sm:$0xff] %v1753_v2  ;;  %v1705_v11 = vmul.f32 %v2069_v44, %v2923_v28  ;;  %v1715_v12 = vmul.f32 %v2099_v58, %v1626_v1 }
 0x235   : > { %v2071_v3 = vpop.f32.mrf.mxu0  ;;  %v2101_v9 = vpop.f32.mrf.mxu1 }
 0x236   : > { %v2072_v5 = vadd.f32 %v2071_v3, %v2070_v62  ;;  %v2102_v15 = vadd.f32 %v2101_v9, %v2100_v63  ;;  %v1744_v23 = vadd.f32 %v2932_v42, %v1705_v11  ;;  %v1754_v24 = vadd.f32 %v2932_v42, %v1715_v12  ;;  %v1666_v62 = vpop.permute.xlu0 %1665  ;;  %v1671_v9 = vpop.permute.xlu1 %1670 }
 0x237   : > { %v2073_v17 = vpop.f32.mrf.mxu0  ;;  %v2103_v35 = vpop.f32.mrf.mxu1 }
 0x238   : > { %1776 = vst [vmem:[%s2938_s26 + $0x38] sm:$0xff] %v1744_v23  ;;  %1786 = vst [vmem:[%s2938_s26 + $0x88] sm:$0xff] %v1754_v24  ;;  %v1706_v30 = vmul.f32 %v2072_v5, %v2925_v41  ;;  %v1716_v31 = vmul.f32 %v2102_v15, %v1631_v21 }
 0x239   : > { %v2074_v26 = vpop.f32.mrf.mxu0  ;;  %v2104_v43 = vpop.f32.mrf.mxu1 }
 0x23a   : > { %v2075_v28 = vadd.f32 %v2074_v26, %v2073_v17  ;;  %v2105_v33 = vadd.f32 %v2104_v43, %v2103_v35  ;;  %v1745_v52 = vadd.f32 %v2932_v42, %v1706_v30  ;;  %v1755_v38 = vadd.f32 %v2932_v42, %v1716_v31  ;;  %v1676_v35 = vpop.permute.xlu0 %1675  ;;  %v1681_v30 = vpop.permute.xlu1 %1680 }
 0x23b   : > { %v2106_v34 = vpop.f32.mrf.mxu1 }
 0x23c   : > { %1777 = vst [vmem:[%s2938_s26 + $0x40] sm:$0xff] %v1745_v52  ;;  %1787 = vst [vmem:[%s2938_s26 + $0x90] sm:$0xff] %v1755_v38  ;;  %v1707_v60 = vmul.f32 %v2075_v28, %v2927_v51  ;;  %v1717_v7 = vmul.f32 %v2105_v33, %v1636_v39 }
 0x23d   : > { %v2107_v40 = vpop.f32.mrf.mxu1 }
 0x23e   : > { %v2108_v0 = vadd.f32 %v2107_v40, %v2106_v34  ;;  %v1746_v45 = vadd.f32 %v2932_v42, %v1707_v60  ;;  %v1756_v61 = vadd.f32 %v2932_v42, %v1717_v7  ;;  %v1686_v38 = vpop.permute.xlu0 %1685 }
 0x23f   : > { %v2109_v41 = vpop.f32.mrf.mxu1 }
 0x240   : > { %1778 = vst [vmem:[%s2938_s26 + $0x48] sm:$0xff] %v1746_v45  ;;  %1788 = vst [vmem:[%s2938_s26 + $0x98] sm:$0xff] %v1756_v61  ;;  %v1718_v47 = vmul.f32 %v2108_v0, %v1641_v4 }
 0x241   : > { %v2110_v20 = vpop.f32.mrf.mxu1 }
 0x242   : > { %v2111_v14 = vadd.f32 %v2110_v20, %v2109_v41  ;;  %v1757_v10 = vadd.f32 %v2932_v42, %v1718_v47  ;;  %v1691_v41 = vpop.permute.xlu1 %1690  ;;  %v1696_v47 = vpop.permute.xlu0 %1695 }
 0x243   : > { %v2112_v29 = vpop.f32.mrf.mxu1 }
 0x244   : > { %1789 = vst [vmem:[%s2938_s26 + $0xa0] sm:$0xff] %v1757_v10  ;;  %v1719_v6 = vmul.f32 %v2111_v14, %v1646_v36 }
 0x245   : > { %v2113_v51 = vpop.f32.mrf.mxu1 }
 0x246   : > { %v2114_v16 = vadd.f32 %v2113_v51, %v2112_v29  ;;  %v1758_v18 = vadd.f32 %v2932_v42, %v1719_v6 }
 0x247   : > { %v2115_v53 = vpop.f32.mrf.mxu1 }
 0x248   : > { %1790 = vst [vmem:[%s2938_s26 + $0xa8] sm:$0xff] %v1758_v18  ;;  %v1720_v22 = vmul.f32 %v2114_v16, %v1651_v37 }
 0x249   : > { %v2116_v54 = vpop.f32.mrf.mxu1 }
 0x24a   : > { %v2117_v59 = vadd.f32 %v2116_v54, %v2115_v53  ;;  %v1759_v48 = vadd.f32 %v2932_v42, %v1720_v22 }
 0x24b   : > { %v2118_v8 = vpop.f32.mrf.mxu1 }
 0x24c   : > { %1791 = vst [vmem:[%s2938_s26 + $0xb0] sm:$0xff] %v1759_v48  ;;  %v1721_v25 = vmul.f32 %v2117_v59, %v1656_v13 }
 0x24d   : > { %v2119_v46 = vpop.f32.mrf.mxu1 }
 0x24e   : > { %v2120_v19 = vadd.f32 %v2119_v46, %v2118_v8  ;;  %v1760_v50 = vadd.f32 %v2932_v42, %v1721_v25 }
 0x24f   : > { %v2121_v32 = vpop.f32.mrf.mxu1 }
 0x250   : > { %1792 = vst [vmem:[%s2938_s26 + $0xb8] sm:$0xff] %v1760_v50  ;;  %v1722_v56 = vmul.f32 %v2120_v19, %v1661_v55 }
 0x251   : > { %v2122_v49 = vpop.f32.mrf.mxu1 }
 0x252   : > { %v2123_v57 = vadd.f32 %v2122_v49, %v2121_v32  ;;  %v1761_v58 = vadd.f32 %v2932_v42, %v1722_v56 }
 0x253   : > { %v2124_v44 = vpop.f32.mrf.mxu1 }
 0x254   : > { %1793 = vst [vmem:[%s2938_s26 + $0xc0] sm:$0xff] %v1761_v58  ;;  %v1723_v1 = vmul.f32 %v2123_v57, %v1666_v62 }
 0x255   : > { %v2125_v63 = vpop.f32.mrf.mxu1 }
 0x256   : > { %v2126_v27 = vadd.f32 %v2125_v63, %v2124_v44  ;;  %v1762_v3 = vadd.f32 %v2932_v42, %v1723_v1 }
 0x257   : > { %v2127_v2 = vpop.f32.mrf.mxu1 }
 0x258   : > { %1794 = vst [vmem:[%s2938_s26 + $0xc8] sm:$0xff] %v1762_v3  ;;  %v1724_v12 = vmul.f32 %v2126_v27, %v1671_v9 }
 0x259   : > { %v2128_v11 = vpop.f32.mrf.mxu1 }
 0x25a   : > { %v2129_v5 = vadd.f32 %v2128_v11, %v2127_v2  ;;  %v1763_v17 = vadd.f32 %v2932_v42, %v1724_v12 }
 0x25b   : > { %v2130_v15 = vpop.f32.mrf.mxu1 }
 0x25c   : > { %1795 = vst [vmem:[%s2938_s26 + $0xd0] sm:$0xff] %v1763_v17  ;;  %v1725_v23 = vmul.f32 %v2129_v5, %v1676_v35 }
 0x25d   : > { %v2131_v21 = vpop.f32.mrf.mxu1 }
 0x25e   : > { %v2132_v24 = vadd.f32 %v2131_v21, %v2130_v15  ;;  %v1764_v43 = vadd.f32 %v2932_v42, %v1725_v23 }
 0x25f   : > { %v2133_v26 = vpop.f32.mrf.mxu1 }
 0x260   : > { %1796 = vst [vmem:[%s2938_s26 + $0xd8] sm:$0xff] %v1764_v43  ;;  %v1726_v28 = vmul.f32 %v2132_v24, %v1681_v30 }
 0x261   : > { %v2134_v31 = vpop.f32.mrf.mxu1 }
 0x262   : > { %v2135_v33 = vadd.f32 %v2134_v31, %v2133_v26  ;;  %v1765_v52 = vadd.f32 %v2932_v42, %v1726_v28 }
 0x263   : > { %v2136_v34 = vpop.f32.mrf.mxu1 }
 0x264   : > { %1797 = vst [vmem:[%s2938_s26 + $0xe0] sm:$0xff] %v1765_v52  ;;  %v1727_v40 = vmul.f32 %v2135_v33, %v1686_v38 }
 0x265   : > { %v2137_v39 = vpop.f32.mrf.mxu1 }
 0x266   : > { %v2138_v60 = vadd.f32 %v2137_v39, %v2136_v34  ;;  %v1766_v0 = vadd.f32 %v2932_v42, %v1727_v40 }
 0x267   : > { %v2139_v7 = vpop.f32.mrf.mxu1 }
 0x268   : > { %1798 = vst [vmem:[%s2938_s26 + $0xe8] sm:$0xff] %v1766_v0  ;;  %v1728_v61 = vmul.f32 %v2138_v60, %v1691_v41 }
 0x269   : > { %v2140_v45 = vpop.f32.mrf.mxu1 }
 0x26a   : > { %v2141_v4 = vadd.f32 %v2140_v45, %v2139_v7  ;;  %v1767_v20 = vadd.f32 %v2932_v42, %v1728_v61 }
 0x26c   : > { %1799 = vst [vmem:[%s2938_s26 + $0xf0] sm:$0xff] %v1767_v20  ;;  %v1729_v14 = vmul.f32 %v2141_v4, %v1696_v47 }
 0x26e   : > { %v1768_v29 = vadd.f32 %v2932_v42, %v1729_v14 }
 0x270   : > { %1800 = vst [vmem:[%s2938_s26 + $0xf8] sm:$0xff] %v1768_v29 }
 0x271   : > { %2405 = shalt.err (!%p2402_p7)
}
 0x272   : > { %s2406_s14 = scalar_lea.hbm %s3011_s9, 4096  ;;  %s2410_s27 = scalar_lea.hbm %s3067_s4, 8192 }
 0x273   : > { %p2407_p10 = scmp.ne.s32.totalorder %s3011_s9, %s2406_s14  ;;  %p2411_p2 = scmp.lt.s32.totalorder %s3011_s9, %s3067_s4 }
 0x274   : > { %p2412_p12 = scmp.lt.s32.totalorder %s2410_s27, %s2406_s14 }
 0x275   : > { %p2408_p4 = pnand %p2407_p10, %p2558_p9 }
 0x276   : > { %p2413_p8 = por %p2412_p12, %p2411_p2 }
 0x277   : > { %p2409_p13 = pneg %p2408_p4 }
 0x279   : > { %p2414_p0 = pnand %p2413_p8, %p2409_p13 }
 0x27b   : > { %2417 = shalt.err (!%p2414_p0)
}
 0x27c   : > { %s2480_s25 = smov 128   ;;  %s2481_s7 = smov 8  }
 0x27d   : > { %2194 = dma.vmem_to_hbm [thread:$0]  (%p2558_p9), %s3013_s5, 4096, %s3011_s9, %s1802_s10, %s2480_s25, %s2480_s25, %s2481_s7  }
 0x27e PF: > { %s1832_s8 = sand.u32 1, %s2452_s15   ;;  %p3073_p1 = scmp.ge.s32.totalorder %s2472_s20, 2 }
 0x27f   : > { %s1833_s11 = scalar_lea.sflag [#allocation5], %s1832_s8 }
 0x280   : > { %p2201_p3 = pnand %p3073_p1, %p2565_p11 }
 0x282   : > { %p2202_p5 = pneg %p2201_p3 }
 0x284   : > { %2447 = dma.done.wait (%p2202_p5), %s1833_s11, 4096  }
 0x285   : > { %2449 = vsyncadd (%p2202_p5), %s1833_s11, 4294963200  ;;  %s20_s20 = sadd.s32 1, %s2472_s20   ;;  %s3074_s15 = smov %s2456_s16 }
 0x286   : > { %p17_p6 = scmp.ge.s32.totalorder %s20_s20, 4   ;;  %s3075_s16 = smov %s2460_s17 }
 0x287   : > { %s3076_s17 = smov %s2563_s29  ;;  %s3077_s18 = smov %s2468_s19 }
 0x288   : > { %s3078_s19 = smov %s3080_s23  ;;  %19 = sbr.rel (!%p17_p6) target bundleno = 6 (0x6), region = 92 }
 0x28d   :  { %1838 = vsyncpa [#allocation4], 1 }
 0x28e   :  { %1840 = vsyncpa [#allocation4 + $0x1], 1 }
 0x28f   :  { %1841 = vsyncpa [#allocation5], 1 }
 0x290   :  { %1843 = vsyncpa [#allocation5 + $0x1], 1 }

</bundles_post_ra>
